<compile_context>
chip_gen: v7x
topology: tpu7x:2x2x1
jax: 0.10.0
libtpu: 0.0.40
codegen_flags: <defaults>
</compile_context>

<pallas_src>
import functools

import numpy as np

import jax
import jax.numpy as jnp
from jax.experimental import pallas as pl
from jax.experimental.pallas import tpu as pltpu

K = 7  # conv kernel size (must be odd)


def _round_up(v, m):
    return (v + m - 1) // m * m


def _pick_chunk(hwp):
    """Largest multiple-of-128 divisor of hwp, capped at 1024 lanes."""
    if hwp <= 1024:
        return hwp
    best = 128
    for c in range(128, 1025, 128):
        if hwp % c == 0:
            best = c
    return best


def _spatial_attention_kernel(w_ref, col_ref, x_ref, o_ref, buf_ref, *,
                              width, ksize, chunk, pad_left, hw_p):
    # w_ref  : SMEM (2*K*K,) f32   conv weights (plane0=avg taps, plane1=max)
    # col_ref: VMEM (1, HWp) i32   column index (p mod W) per flat position
    # x_ref  : VMEM (Bt, C, HWp)   input tile (lane-dense)
    # o_ref  : VMEM (Bt, C, HWp)   output tile
    # buf_ref: VMEM (2, Bt, padL + HWp + padR) f32 pooled planes + zero border
    bt, C, _ = x_ref.shape
    kk = ksize * ksize
    p = ksize // 2
    inv_c = 1.0 / C

    # ---- conv weights: 98 scalar reads from SMEM, hoisted out of all loops --
    wa = [w_ref[t] for t in range(kk)]        # applied to the mean plane
    wb = [w_ref[kk + t] for t in range(kk)]   # applied to the max plane

    # ---- zero only the borders (interior is fully overwritten below) --------
    pad_right = buf_ref.shape[2] - pad_left - hw_p
    buf_ref[:, :, 0:pad_left] = jnp.zeros((2, bt, pad_left), jnp.float32)
    buf_ref[:, :, pad_left + hw_p:pad_left + hw_p + pad_right] = (
        jnp.zeros((2, bt, pad_right), jnp.float32))

    cc = min(C, 8)                       # channel chunk (sublane-sized)
    n_chunks = hw_p // chunk

    # ---- pass 1: fused channel mean/max pooling, staged into buf interior ---
    for ci in range(n_chunks):
        j0 = ci * chunk
        s_acc = jnp.zeros((bt, chunk), jnp.float32)
        m_acc = jnp.full((bt, chunk), -jnp.inf, jnp.float32)
        for c0 in range(0, C, cc):
            c1 = min(C, c0 + cc)
            blk = x_ref[:, c0:c1, j0:j0 + chunk]
            s_acc = s_acc + jnp.sum(blk.astype(jnp.float32), axis=1)
            m_acc = jnp.maximum(m_acc,
                                jnp.max(blk, axis=1).astype(jnp.float32))
        buf_ref[0, :, pad_left + j0:pad_left + j0 + chunk] = s_acc * inv_c
        buf_ref[1, :, pad_left + j0:pad_left + j0 + chunk] = m_acc

    # ---- pass 2: 7x7 conv (vreg-resident acc) + sigmoid + reweight ----------
    for ci in range(n_chunks):
        j0 = ci * chunk
        col = col_ref[:, j0:j0 + chunk]            # (1, chunk) int32 columns
        acc = jnp.zeros((bt, chunk), jnp.float32)
        for kx in range(ksize):
            dx = kx - p
            part = jnp.zeros((bt, chunk), jnp.float32)
            for ky in range(ksize):
                dy = ky - p
                t = ky * ksize + kx
                s = pad_left + j0 + dy * width + dx
                part = (part
                        + wa[t] * buf_ref[0, :, s:s + chunk]
                        + wb[t] * buf_ref[1, :, s:s + chunk])
            if dx == 0:
                acc = acc + part                     # center column: always valid
            else:
                # column-validity mask (kills horizontal wrap between rows)
                valid = (col < width - dx) if dx > 0 else (col >= -dx)
                acc = acc + jnp.where(valid, part, 0.0)

        att = jax.nn.sigmoid(acc).astype(o_ref.dtype)    # (bt, chunk)
        o_ref[:, :, j0:j0 + chunk] = (
            x_ref[:, :, j0:j0 + chunk] * att[:, None, :])


def spatial_attention(x, w):
    """x: (B, C, H, W); w: (1, 2, K, K) conv weight (no bias)."""
    B, C, H, W = x.shape
    assert w.shape[0] == 1 and w.shape[1] == 2 and w.shape[2] == w.shape[3]
    ksize = int(w.shape[-1])
    assert ksize % 2 == 1
    pad = ksize // 2

    HW = H * W
    HWp = _round_up(HW, 128)                 # lane-dense, unmasked big ops
    offmax = pad * W + pad                   # largest |flat tap offset|
    padside = _round_up(offmax, 128)         # aligned interior start
    buf_lanes = padside + HWp + padside
    itemsize = x.dtype.itemsize

    # ---- layout plumbing: lane-dense (B, C, HWp) slabs -----------------------
    x3 = x.reshape(B, C, HW)
    if HWp != HW:
        x3 = jnp.pad(x3, ((0, 0), (0, 0), (0, HWp - HW)))

    w_flat = w.reshape(-1).astype(jnp.float32)                    # (2*K*K,)
    colmap = jnp.asarray(np.arange(HWp, dtype=np.int32) % W).reshape(1, HWp)

    # ---- per-generation VMEM budget ------------------------------------------
    try:
        vmem_cap = int(getattr(pltpu.get_tpu_info(), "vmem_capacity_bytes",
                               64 << 20))
    except Exception:  # pragma: no cover - conservative fallback
        vmem_cap = 64 << 20
    if vmem_cap <= (64 << 20):                      # v7x-class: leave headroom
        hard_cap = vmem_cap - (12 << 20)
    else:                                           # v5e / v6e: 128 MiB physical
        hard_cap = min(vmem_cap - (24 << 20), 100 << 20)
    budget = int(hard_cap * 0.7)

    # ---- batch blocking: prefer Bt % 8 == 0 and grid >= 2, within budget -----
    per_b = 4 * C * HWp * itemsize + 2 * buf_lanes * 4   # dbl-buf io + scratch
    divisors = [d for d in range(1, B + 1) if B % d == 0]
    fitting = [d for d in divisors if d * per_b <= budget] or [1]
    pref = [d for d in fitting if d % 8 == 0 and B // d >= 2]
    if not pref:
        pref = [d for d in fitting if d % 8 == 0]
    bt = max(pref) if pref else max(fitting)
    grid = (B // bt,)

    footprint = bt * per_b + 2 * HWp * 4 + (4 << 20)
    vmem_limit = int(max(32 << 20, min(hard_cap, footprint + (8 << 20))))

    chunk = _pick_chunk(HWp)

    kern = functools.partial(
        _spatial_attention_kernel,
        width=W, ksize=ksize, chunk=chunk, pad_left=padside, hw_p=HWp)

    out3 = pl.pallas_call(
        kern,
        out_shape=jax.ShapeDtypeStruct((B, C, HWp), x.dtype),
        grid=grid,
        in_specs=[
            pl.BlockSpec(memory_space=pltpu.MemorySpace.SMEM),        # weights
            pl.BlockSpec((1, HWp), lambda b: (0, 0)),                 # col map
            pl.BlockSpec((bt, C, HWp), lambda b: (b, 0, 0)),          # x tile
        ],
        out_specs=pl.BlockSpec((bt, C, HWp), lambda b: (b, 0, 0)),
        scratch_shapes=[pltpu.VMEM((2, bt, buf_lanes), jnp.float32)],
        compiler_params=pltpu.CompilerParams(
            dimension_semantics=("parallel",),
            vmem_limit_bytes=vmem_limit),
    )(w_flat, colmap, x3)

    if HWp != HW:
        out3 = out3[:, :, :HW]
    return out3.reshape(B, C, H, W)


def reference(x, w):
    """Pure-JAX reference matching the PyTorch forward exactly."""
    pad = w.shape[-1] // 2
    avg = jnp.mean(x, axis=1, keepdims=True)
    mx = jnp.max(x, axis=1, keepdims=True)
    pooled = jnp.concatenate([avg, mx], axis=1)
    att = jax.lax.conv_general_dilated(
        pooled, w, window_strides=(1, 1),
        padding=((pad, pad), (pad, pad)),
        dimension_numbers=("NCHW", "OIHW", "NCHW"))
    return x * jax.nn.sigmoid(att)


if __name__ == "__main__":
    key = jax.random.PRNGKey(0)
    kx_, kw_ = jax.random.split(key)

    B, C, H, W = 2, 4, 16, 16
    x = jax.random.normal(kx_, (B, C, H, W), dtype=jnp.float32)
    # deterministic synthetic conv weight, shape (out=1, in=2, K, K), no bias
    w = jax.random.normal(kw_, (1, 2, K, K), dtype=jnp.float32) * 0.1

    out = jax.block_until_ready(spatial_attention(x, w))

    ref = reference(x, w)
    assert out.shape == x.shape and out.dtype == x.dtype
    err = float(jnp.max(jnp.abs(out - ref)))
    assert jnp.allclose(out, ref, atol=1e-4, rtol=1e-4), err
    print("KERNEL_OK")
</pallas_src>

<mosaic_0001>
module attributes {stable_mosaic.version = 11 : i64} {
  func.func @_spatial_attention_kernel(%arg0: i32, %arg1: memref<98xf32, #tpu.memory_space<smem>>, %arg2: memref<1x256xi32, #tpu.memory_space<vmem>>, %arg3: memref<2x4x256xf32, #tpu.memory_space<vmem>>, %arg4: memref<2x4x256xf32, #tpu.memory_space<vmem>>, %arg5: memref<2x2x512xf32, #tpu.memory_space<vmem>>) attributes {dimension_semantics = [#tpu.dimension_semantics<parallel>], iteration_bounds = array<i64: 1>, scalar_prefetch = 0 : i64, scratch_operands = 1 : i64, tpu.core_type = #tpu.core_type<tc>, window_params = [{transform_indices = @transform_0, window_bounds = array<i64: 98>}, {pipeline_mode = #tpu.pipeline_mode<synchronous>, transform_indices = @transform_1, window_bounds = array<i64: 1, 256>}, {transform_indices = @transform_2, window_bounds = array<i64: 2, 4, 256>}, {transform_indices = @transform_3, window_bounds = array<i64: 2, 4, 256>}]} {
    %c0 = arith.constant 0 : index
    %0 = memref.load %arg1[%c0] : memref<98xf32, #tpu.memory_space<smem>>
    %c1 = arith.constant 1 : index
    %1 = memref.load %arg1[%c1] : memref<98xf32, #tpu.memory_space<smem>>
    %c2 = arith.constant 2 : index
    %2 = memref.load %arg1[%c2] : memref<98xf32, #tpu.memory_space<smem>>
    %c3 = arith.constant 3 : index
    %3 = memref.load %arg1[%c3] : memref<98xf32, #tpu.memory_space<smem>>
    %c4 = arith.constant 4 : index
    %4 = memref.load %arg1[%c4] : memref<98xf32, #tpu.memory_space<smem>>
    %c5 = arith.constant 5 : index
    %5 = memref.load %arg1[%c5] : memref<98xf32, #tpu.memory_space<smem>>
    %c6 = arith.constant 6 : index
    %6 = memref.load %arg1[%c6] : memref<98xf32, #tpu.memory_space<smem>>
    %c7 = arith.constant 7 : index
    %7 = memref.load %arg1[%c7] : memref<98xf32, #tpu.memory_space<smem>>
    %c8 = arith.constant 8 : index
    %8 = memref.load %arg1[%c8] : memref<98xf32, #tpu.memory_space<smem>>
    %c9 = arith.constant 9 : index
    %9 = memref.load %arg1[%c9] : memref<98xf32, #tpu.memory_space<smem>>
    %c10 = arith.constant 10 : index
    %10 = memref.load %arg1[%c10] : memref<98xf32, #tpu.memory_space<smem>>
    %c11 = arith.constant 11 : index
    %11 = memref.load %arg1[%c11] : memref<98xf32, #tpu.memory_space<smem>>
    %c12 = arith.constant 12 : index
    %12 = memref.load %arg1[%c12] : memref<98xf32, #tpu.memory_space<smem>>
    %c13 = arith.constant 13 : index
    %13 = memref.load %arg1[%c13] : memref<98xf32, #tpu.memory_space<smem>>
    %c14 = arith.constant 14 : index
    %14 = memref.load %arg1[%c14] : memref<98xf32, #tpu.memory_space<smem>>
    %c15 = arith.constant 15 : index
    %15 = memref.load %arg1[%c15] : memref<98xf32, #tpu.memory_space<smem>>
    %c16 = arith.constant 16 : index
    %16 = memref.load %arg1[%c16] : memref<98xf32, #tpu.memory_space<smem>>
    %c17 = arith.constant 17 : index
    %17 = memref.load %arg1[%c17] : memref<98xf32, #tpu.memory_space<smem>>
    %c18 = arith.constant 18 : index
    %18 = memref.load %arg1[%c18] : memref<98xf32, #tpu.memory_space<smem>>
    %c19 = arith.constant 19 : index
    %19 = memref.load %arg1[%c19] : memref<98xf32, #tpu.memory_space<smem>>
    %c20 = arith.constant 20 : index
    %20 = memref.load %arg1[%c20] : memref<98xf32, #tpu.memory_space<smem>>
    %c21 = arith.constant 21 : index
    %21 = memref.load %arg1[%c21] : memref<98xf32, #tpu.memory_space<smem>>
    %c22 = arith.constant 22 : index
    %22 = memref.load %arg1[%c22] : memref<98xf32, #tpu.memory_space<smem>>
    %c23 = arith.constant 23 : index
    %23 = memref.load %arg1[%c23] : memref<98xf32, #tpu.memory_space<smem>>
    %c24 = arith.constant 24 : index
    %24 = memref.load %arg1[%c24] : memref<98xf32, #tpu.memory_space<smem>>
    %c25 = arith.constant 25 : index
    %25 = memref.load %arg1[%c25] : memref<98xf32, #tpu.memory_space<smem>>
    %c26 = arith.constant 26 : index
    %26 = memref.load %arg1[%c26] : memref<98xf32, #tpu.memory_space<smem>>
    %c27 = arith.constant 27 : index
    %27 = memref.load %arg1[%c27] : memref<98xf32, #tpu.memory_space<smem>>
    %c28 = arith.constant 28 : index
    %28 = memref.load %arg1[%c28] : memref<98xf32, #tpu.memory_space<smem>>
    %c29 = arith.constant 29 : index
    %29 = memref.load %arg1[%c29] : memref<98xf32, #tpu.memory_space<smem>>
    %c30 = arith.constant 30 : index
    %30 = memref.load %arg1[%c30] : memref<98xf32, #tpu.memory_space<smem>>
    %c31 = arith.constant 31 : index
    %31 = memref.load %arg1[%c31] : memref<98xf32, #tpu.memory_space<smem>>
    %c32 = arith.constant 32 : index
    %32 = memref.load %arg1[%c32] : memref<98xf32, #tpu.memory_space<smem>>
    %c33 = arith.constant 33 : index
    %33 = memref.load %arg1[%c33] : memref<98xf32, #tpu.memory_space<smem>>
    %c34 = arith.constant 34 : index
    %34 = memref.load %arg1[%c34] : memref<98xf32, #tpu.memory_space<smem>>
    %c35 = arith.constant 35 : index
    %35 = memref.load %arg1[%c35] : memref<98xf32, #tpu.memory_space<smem>>
    %c36 = arith.constant 36 : index
    %36 = memref.load %arg1[%c36] : memref<98xf32, #tpu.memory_space<smem>>
    %c37 = arith.constant 37 : index
    %37 = memref.load %arg1[%c37] : memref<98xf32, #tpu.memory_space<smem>>
    %c38 = arith.constant 38 : index
    %38 = memref.load %arg1[%c38] : memref<98xf32, #tpu.memory_space<smem>>
    %c39 = arith.constant 39 : index
    %39 = memref.load %arg1[%c39] : memref<98xf32, #tpu.memory_space<smem>>
    %c40 = arith.constant 40 : index
    %40 = memref.load %arg1[%c40] : memref<98xf32, #tpu.memory_space<smem>>
    %c41 = arith.constant 41 : index
    %41 = memref.load %arg1[%c41] : memref<98xf32, #tpu.memory_space<smem>>
    %c42 = arith.constant 42 : index
    %42 = memref.load %arg1[%c42] : memref<98xf32, #tpu.memory_space<smem>>
    %c43 = arith.constant 43 : index
    %43 = memref.load %arg1[%c43] : memref<98xf32, #tpu.memory_space<smem>>
    %c44 = arith.constant 44 : index
    %44 = memref.load %arg1[%c44] : memref<98xf32, #tpu.memory_space<smem>>
    %c45 = arith.constant 45 : index
    %45 = memref.load %arg1[%c45] : memref<98xf32, #tpu.memory_space<smem>>
    %c46 = arith.constant 46 : index
    %46 = memref.load %arg1[%c46] : memref<98xf32, #tpu.memory_space<smem>>
    %c47 = arith.constant 47 : index
    %47 = memref.load %arg1[%c47] : memref<98xf32, #tpu.memory_space<smem>>
    %c48 = arith.constant 48 : index
    %48 = memref.load %arg1[%c48] : memref<98xf32, #tpu.memory_space<smem>>
    %c49 = arith.constant 49 : index
    %49 = memref.load %arg1[%c49] : memref<98xf32, #tpu.memory_space<smem>>
    %c50 = arith.constant 50 : index
    %50 = memref.load %arg1[%c50] : memref<98xf32, #tpu.memory_space<smem>>
    %c51 = arith.constant 51 : index
    %51 = memref.load %arg1[%c51] : memref<98xf32, #tpu.memory_space<smem>>
    %c52 = arith.constant 52 : index
    %52 = memref.load %arg1[%c52] : memref<98xf32, #tpu.memory_space<smem>>
    %c53 = arith.constant 53 : index
    %53 = memref.load %arg1[%c53] : memref<98xf32, #tpu.memory_space<smem>>
    %c54 = arith.constant 54 : index
    %54 = memref.load %arg1[%c54] : memref<98xf32, #tpu.memory_space<smem>>
    %c55 = arith.constant 55 : index
    %55 = memref.load %arg1[%c55] : memref<98xf32, #tpu.memory_space<smem>>
    %c56 = arith.constant 56 : index
    %56 = memref.load %arg1[%c56] : memref<98xf32, #tpu.memory_space<smem>>
    %c57 = arith.constant 57 : index
    %57 = memref.load %arg1[%c57] : memref<98xf32, #tpu.memory_space<smem>>
    %c58 = arith.constant 58 : index
    %58 = memref.load %arg1[%c58] : memref<98xf32, #tpu.memory_space<smem>>
    %c59 = arith.constant 59 : index
    %59 = memref.load %arg1[%c59] : memref<98xf32, #tpu.memory_space<smem>>
    %c60 = arith.constant 60 : index
    %60 = memref.load %arg1[%c60] : memref<98xf32, #tpu.memory_space<smem>>
    %c61 = arith.constant 61 : index
    %61 = memref.load %arg1[%c61] : memref<98xf32, #tpu.memory_space<smem>>
    %c62 = arith.constant 62 : index
    %62 = memref.load %arg1[%c62] : memref<98xf32, #tpu.memory_space<smem>>
    %c63 = arith.constant 63 : index
    %63 = memref.load %arg1[%c63] : memref<98xf32, #tpu.memory_space<smem>>
    %c64 = arith.constant 64 : index
    %64 = memref.load %arg1[%c64] : memref<98xf32, #tpu.memory_space<smem>>
    %c65 = arith.constant 65 : index
    %65 = memref.load %arg1[%c65] : memref<98xf32, #tpu.memory_space<smem>>
    %c66 = arith.constant 66 : index
    %66 = memref.load %arg1[%c66] : memref<98xf32, #tpu.memory_space<smem>>
    %c67 = arith.constant 67 : index
    %67 = memref.load %arg1[%c67] : memref<98xf32, #tpu.memory_space<smem>>
    %c68 = arith.constant 68 : index
    %68 = memref.load %arg1[%c68] : memref<98xf32, #tpu.memory_space<smem>>
    %c69 = arith.constant 69 : index
    %69 = memref.load %arg1[%c69] : memref<98xf32, #tpu.memory_space<smem>>
    %c70 = arith.constant 70 : index
    %70 = memref.load %arg1[%c70] : memref<98xf32, #tpu.memory_space<smem>>
    %c71 = arith.constant 71 : index
    %71 = memref.load %arg1[%c71] : memref<98xf32, #tpu.memory_space<smem>>
    %c72 = arith.constant 72 : index
    %72 = memref.load %arg1[%c72] : memref<98xf32, #tpu.memory_space<smem>>
    %c73 = arith.constant 73 : index
    %73 = memref.load %arg1[%c73] : memref<98xf32, #tpu.memory_space<smem>>
    %c74 = arith.constant 74 : index
    %74 = memref.load %arg1[%c74] : memref<98xf32, #tpu.memory_space<smem>>
    %c75 = arith.constant 75 : index
    %75 = memref.load %arg1[%c75] : memref<98xf32, #tpu.memory_space<smem>>
    %c76 = arith.constant 76 : index
    %76 = memref.load %arg1[%c76] : memref<98xf32, #tpu.memory_space<smem>>
    %c77 = arith.constant 77 : index
    %77 = memref.load %arg1[%c77] : memref<98xf32, #tpu.memory_space<smem>>
    %c78 = arith.constant 78 : index
    %78 = memref.load %arg1[%c78] : memref<98xf32, #tpu.memory_space<smem>>
    %c79 = arith.constant 79 : index
    %79 = memref.load %arg1[%c79] : memref<98xf32, #tpu.memory_space<smem>>
    %c80 = arith.constant 80 : index
    %80 = memref.load %arg1[%c80] : memref<98xf32, #tpu.memory_space<smem>>
    %c81 = arith.constant 81 : index
    %81 = memref.load %arg1[%c81] : memref<98xf32, #tpu.memory_space<smem>>
    %c82 = arith.constant 82 : index
    %82 = memref.load %arg1[%c82] : memref<98xf32, #tpu.memory_space<smem>>
    %c83 = arith.constant 83 : index
    %83 = memref.load %arg1[%c83] : memref<98xf32, #tpu.memory_space<smem>>
    %c84 = arith.constant 84 : index
    %84 = memref.load %arg1[%c84] : memref<98xf32, #tpu.memory_space<smem>>
    %c85 = arith.constant 85 : index
    %85 = memref.load %arg1[%c85] : memref<98xf32, #tpu.memory_space<smem>>
    %c86 = arith.constant 86 : index
    %86 = memref.load %arg1[%c86] : memref<98xf32, #tpu.memory_space<smem>>
    %c87 = arith.constant 87 : index
    %87 = memref.load %arg1[%c87] : memref<98xf32, #tpu.memory_space<smem>>
    %c88 = arith.constant 88 : index
    %88 = memref.load %arg1[%c88] : memref<98xf32, #tpu.memory_space<smem>>
    %c89 = arith.constant 89 : index
    %89 = memref.load %arg1[%c89] : memref<98xf32, #tpu.memory_space<smem>>
    %c90 = arith.constant 90 : index
    %90 = memref.load %arg1[%c90] : memref<98xf32, #tpu.memory_space<smem>>
    %c91 = arith.constant 91 : index
    %91 = memref.load %arg1[%c91] : memref<98xf32, #tpu.memory_space<smem>>
    %c92 = arith.constant 92 : index
    %92 = memref.load %arg1[%c92] : memref<98xf32, #tpu.memory_space<smem>>
    %c93 = arith.constant 93 : index
    %93 = memref.load %arg1[%c93] : memref<98xf32, #tpu.memory_space<smem>>
    %c94 = arith.constant 94 : index
    %94 = memref.load %arg1[%c94] : memref<98xf32, #tpu.memory_space<smem>>
    %c95 = arith.constant 95 : index
    %95 = memref.load %arg1[%c95] : memref<98xf32, #tpu.memory_space<smem>>
    %c96 = arith.constant 96 : index
    %96 = memref.load %arg1[%c96] : memref<98xf32, #tpu.memory_space<smem>>
    %c97 = arith.constant 97 : index
    %97 = memref.load %arg1[%c97] : memref<98xf32, #tpu.memory_space<smem>>
    %cst = arith.constant 0.000000e+00 : f32
    %98 = vector.broadcast %cst : f32 to vector<2x2x128xf32>
    %c0_0 = arith.constant 0 : index
    %c0_1 = arith.constant 0 : index
    %c0_2 = arith.constant 0 : index
    %99 = vector.load %arg5[%c0_0, %c0_1, %c0_2] : memref<2x2x512xf32, #tpu.memory_space<vmem>>, vector<2x2x128xf32>
    tpu.vector_store %arg5[%c0_0, %c0_1, %c0_2], %98 {strides = array<i32>} : memref<2x2x512xf32, #tpu.memory_space<vmem>>, vector<2x2x128xf32>,
    %cst_3 = arith.constant 0.000000e+00 : f32
    %100 = vector.broadcast %cst_3 : f32 to vector<2x2x128xf32>
    %c0_4 = arith.constant 0 : index
    %c0_5 = arith.constant 0 : index
    %c384 = arith.constant 384 : index
    %101 = vector.load %arg5[%c0_4, %c0_5, %c384] : memref<2x2x512xf32, #tpu.memory_space<vmem>>, vector<2x2x128xf32>
    tpu.vector_store %arg5[%c0_4, %c0_5, %c384], %100 {strides = array<i32>} : memref<2x2x512xf32, #tpu.memory_space<vmem>>, vector<2x2x128xf32>,
    %cst_6 = arith.constant 0.000000e+00 : f32
    %102 = vector.broadcast %cst_6 : f32 to vector<2x256xf32>
    %cst_7 = arith.constant 0xFF800000 : f32
    %103 = vector.broadcast %cst_7 : f32 to vector<2x256xf32>
    %c0_8 = arith.constant 0 : index
    %c0_9 = arith.constant 0 : index
    %c0_10 = arith.constant 0 : index
    %104 = vector.load %arg3[%c0_8, %c0_9, %c0_10] : memref<2x4x256xf32, #tpu.memory_space<vmem>>, vector<2x4x256xf32>
    %cst_11 = arith.constant dense<0.000000e+00> : vector<2x256xf32>
    %105 = vector.multi_reduction <add>, %104, %cst_11 [1] : vector<2x4x256xf32> to vector<2x256xf32>
    %106 = arith.addf %102, %105 : vector<2x256xf32>
    %cst_12 = arith.constant dense<0xFF800000> : vector<2x256xf32>
    %107 = vector.multi_reduction <maximumf>, %104, %cst_12 [1] : vector<2x4x256xf32> to vector<2x256xf32>
    %108 = arith.maximumf %103, %107 : vector<2x256xf32>
    %cst_13 = arith.constant 2.500000e-01 : f32
    %109 = vector.broadcast %cst_13 : f32 to vector<2x256xf32>
    %110 = arith.mulf %106, %109 : vector<2x256xf32>
    %c0_14 = arith.constant 0 : index
    %c0_15 = arith.constant 0 : index
    %c128 = arith.constant 128 : index
    %111 = vector.load %arg5[%c0_14, %c0_15, %c128] : memref<2x2x512xf32, #tpu.memory_space<vmem>>, vector<1x2x256xf32>
    %112 = vector.shape_cast %111 : vector<1x2x256xf32> to vector<2x256xf32>
    %113 = vector.shape_cast %110 : vector<2x256xf32> to vector<1x2x256xf32>
    tpu.vector_store %arg5[%c0_14, %c0_15, %c128], %113 {strides = array<i32>} : memref<2x2x512xf32, #tpu.memory_space<vmem>>, vector<1x2x256xf32>,
    %c1_16 = arith.constant 1 : index
    %c0_17 = arith.constant 0 : index
    %c128_18 = arith.constant 128 : index
    %114 = vector.load %arg5[%c1_16, %c0_17, %c128_18] : memref<2x2x512xf32, #tpu.memory_space<vmem>>, vector<1x2x256xf32>
    %115 = vector.shape_cast %114 : vector<1x2x256xf32> to vector<2x256xf32>
    %116 = vector.shape_cast %108 : vector<2x256xf32> to vector<1x2x256xf32>
    tpu.vector_store %arg5[%c1_16, %c0_17, %c128_18], %116 {strides = array<i32>} : memref<2x2x512xf32, #tpu.memory_space<vmem>>, vector<1x2x256xf32>,
    %c0_19 = arith.constant 0 : index
    %c0_20 = arith.constant 0 : index
    %117 = vector.load %arg2[%c0_19, %c0_20] : memref<1x256xi32, #tpu.memory_space<vmem>>, vector<1x256xi32>
    %cst_21 = arith.constant 0.000000e+00 : f32
    %118 = vector.broadcast %cst_21 : f32 to vector<2x256xf32>
    %cst_22 = arith.constant 0.000000e+00 : f32
    %119 = vector.broadcast %cst_22 : f32 to vector<2x256xf32>
    %c0_23 = arith.constant 0 : index
    %c0_24 = arith.constant 0 : index
    %c77_25 = arith.constant 77 : index
    %120 = vector.load %arg5[%c0_23, %c0_24, %c77_25] : memref<2x2x512xf32, #tpu.memory_space<vmem>>, vector<1x2x256xf32>
    %121 = vector.shape_cast %120 : vector<1x2x256xf32> to vector<2x256xf32>
    %122 = vector.broadcast %0 : f32 to vector<2x256xf32>
    %123 = arith.mulf %122, %121 : vector<2x256xf32>
    %124 = arith.addf %119, %123 : vector<2x256xf32>
    %c1_26 = arith.constant 1 : index
    %c0_27 = arith.constant 0 : index
    %c77_28 = arith.constant 77 : index
    %125 = vector.load %arg5[%c1_26, %c0_27, %c77_28] : memref<2x2x512xf32, #tpu.memory_space<vmem>>, vector<1x2x256xf32>
    %126 = vector.shape_cast %125 : vector<1x2x256xf32> to vector<2x256xf32>
    %127 = vector.broadcast %49 : f32 to vector<2x256xf32>
    %128 = arith.mulf %127, %126 : vector<2x256xf32>
    %129 = arith.addf %124, %128 : vector<2x256xf32>
    %c0_29 = arith.constant 0 : index
    %c0_30 = arith.constant 0 : index
    %c93_31 = arith.constant 93 : index
    %130 = vector.load %arg5[%c0_29, %c0_30, %c93_31] : memref<2x2x512xf32, #tpu.memory_space<vmem>>, vector<1x2x256xf32>
    %131 = vector.shape_cast %130 : vector<1x2x256xf32> to vector<2x256xf32>
    %132 = vector.broadcast %7 : f32 to vector<2x256xf32>
    %133 = arith.mulf %132, %131 : vector<2x256xf32>
    %134 = arith.addf %129, %133 : vector<2x256xf32>
    %c1_32 = arith.constant 1 : index
    %c0_33 = arith.constant 0 : index
    %c93_34 = arith.constant 93 : index
    %135 = vector.load %arg5[%c1_32, %c0_33, %c93_34] : memref<2x2x512xf32, #tpu.memory_space<vmem>>, vector<1x2x256xf32>
    %136 = vector.shape_cast %135 : vector<1x2x256xf32> to vector<2x256xf32>
    %137 = vector.broadcast %56 : f32 to vector<2x256xf32>
    %138 = arith.mulf %137, %136 : vector<2x256xf32>
    %139 = arith.addf %134, %138 : vector<2x256xf32>
    %c0_35 = arith.constant 0 : index
    %c0_36 = arith.constant 0 : index
    %c109 = arith.constant 109 : index
    %140 = vector.load %arg5[%c0_35, %c0_36, %c109] : memref<2x2x512xf32, #tpu.memory_space<vmem>>, vector<1x2x256xf32>
    %141 = vector.shape_cast %140 : vector<1x2x256xf32> to vector<2x256xf32>
    %142 = vector.broadcast %14 : f32 to vector<2x256xf32>
    %143 = arith.mulf %142, %141 : vector<2x256xf32>
    %144 = arith.addf %139, %143 : vector<2x256xf32>
    %c1_37 = arith.constant 1 : index
    %c0_38 = arith.constant 0 : index
    %c109_39 = arith.constant 109 : index
    %145 = vector.load %arg5[%c1_37, %c0_38, %c109_39] : memref<2x2x512xf32, #tpu.memory_space<vmem>>, vector<1x2x256xf32>
    %146 = vector.shape_cast %145 : vector<1x2x256xf32> to vector<2x256xf32>
    %147 = vector.broadcast %63 : f32 to vector<2x256xf32>
    %148 = arith.mulf %147, %146 : vector<2x256xf32>
    %149 = arith.addf %144, %148 : vector<2x256xf32>
    %c0_40 = arith.constant 0 : index
    %c0_41 = arith.constant 0 : index
    %c125 = arith.constant 125 : index
    %150 = vector.load %arg5[%c0_40, %c0_41, %c125] : memref<2x2x512xf32, #tpu.memory_space<vmem>>, vector<1x2x256xf32>
    %151 = vector.shape_cast %150 : vector<1x2x256xf32> to vector<2x256xf32>
    %152 = vector.broadcast %21 : f32 to vector<2x256xf32>
    %153 = arith.mulf %152, %151 : vector<2x256xf32>
    %154 = arith.addf %149, %153 : vector<2x256xf32>
    %c1_42 = arith.constant 1 : index
    %c0_43 = arith.constant 0 : index
    %c125_44 = arith.constant 125 : index
    %155 = vector.load %arg5[%c1_42, %c0_43, %c125_44] : memref<2x2x512xf32, #tpu.memory_space<vmem>>, vector<1x2x256xf32>
    %156 = vector.shape_cast %155 : vector<1x2x256xf32> to vector<2x256xf32>
    %157 = vector.broadcast %70 : f32 to vector<2x256xf32>
    %158 = arith.mulf %157, %156 : vector<2x256xf32>
    %159 = arith.addf %154, %158 : vector<2x256xf32>
    %c0_45 = arith.constant 0 : index
    %c0_46 = arith.constant 0 : index
    %c141 = arith.constant 141 : index
    %160 = vector.load %arg5[%c0_45, %c0_46, %c141] : memref<2x2x512xf32, #tpu.memory_space<vmem>>, vector<1x2x256xf32>
    %161 = vector.shape_cast %160 : vector<1x2x256xf32> to vector<2x256xf32>
    %162 = vector.broadcast %28 : f32 to vector<2x256xf32>
    %163 = arith.mulf %162, %161 : vector<2x256xf32>
    %164 = arith.addf %159, %163 : vector<2x256xf32>
    %c1_47 = arith.constant 1 : index
    %c0_48 = arith.constant 0 : index
    %c141_49 = arith.constant 141 : index
    %165 = vector.load %arg5[%c1_47, %c0_48, %c141_49] : memref<2x2x512xf32, #tpu.memory_space<vmem>>, vector<1x2x256xf32>
    %166 = vector.shape_cast %165 : vector<1x2x256xf32> to vector<2x256xf32>
    %167 = vector.broadcast %77 : f32 to vector<2x256xf32>
    %168 = arith.mulf %167, %166 : vector<2x256xf32>
    %169 = arith.addf %164, %168 : vector<2x256xf32>
    %c0_50 = arith.constant 0 : index
    %c0_51 = arith.constant 0 : index
    %c157 = arith.constant 157 : index
    %170 = vector.load %arg5[%c0_50, %c0_51, %c157] : memref<2x2x512xf32, #tpu.memory_space<vmem>>, vector<1x2x256xf32>
    %171 = vector.shape_cast %170 : vector<1x2x256xf32> to vector<2x256xf32>
    %172 = vector.broadcast %35 : f32 to vector<2x256xf32>
    %173 = arith.mulf %172, %171 : vector<2x256xf32>
    %174 = arith.addf %169, %173 : vector<2x256xf32>
    %c1_52 = arith.constant 1 : index
    %c0_53 = arith.constant 0 : index
    %c157_54 = arith.constant 157 : index
    %175 = vector.load %arg5[%c1_52, %c0_53, %c157_54] : memref<2x2x512xf32, #tpu.memory_space<vmem>>, vector<1x2x256xf32>
    %176 = vector.shape_cast %175 : vector<1x2x256xf32> to vector<2x256xf32>
    %177 = vector.broadcast %84 : f32 to vector<2x256xf32>
    %178 = arith.mulf %177, %176 : vector<2x256xf32>
    %179 = arith.addf %174, %178 : vector<2x256xf32>
    %c0_55 = arith.constant 0 : index
    %c0_56 = arith.constant 0 : index
    %c173 = arith.constant 173 : index
    %180 = vector.load %arg5[%c0_55, %c0_56, %c173] : memref<2x2x512xf32, #tpu.memory_space<vmem>>, vector<1x2x256xf32>
    %181 = vector.shape_cast %180 : vector<1x2x256xf32> to vector<2x256xf32>
    %182 = vector.broadcast %42 : f32 to vector<2x256xf32>
    %183 = arith.mulf %182, %181 : vector<2x256xf32>
    %184 = arith.addf %179, %183 : vector<2x256xf32>
    %c1_57 = arith.constant 1 : index
    %c0_58 = arith.constant 0 : index
    %c173_59 = arith.constant 173 : index
    %185 = vector.load %arg5[%c1_57, %c0_58, %c173_59] : memref<2x2x512xf32, #tpu.memory_space<vmem>>, vector<1x2x256xf32>
    %186 = vector.shape_cast %185 : vector<1x2x256xf32> to vector<2x256xf32>
    %187 = vector.broadcast %91 : f32 to vector<2x256xf32>
    %188 = arith.mulf %187, %186 : vector<2x256xf32>
    %189 = arith.addf %184, %188 : vector<2x256xf32>
    %c3_i32 = arith.constant 3 : i32
    %190 = vector.broadcast %c3_i32 : i32 to vector<1x256xi32>
    %191 = arith.cmpi sge, %117, %190 : vector<1x256xi32>
    %cst_60 = arith.constant 0.000000e+00 : f32
    %192 = vector.shape_cast %191 : vector<1x256xi1> to vector<1x256xi1>
    %193 = vector.broadcast %192 : vector<1x256xi1> to vector<2x256xi1>
    %194 = vector.broadcast %cst_60 : f32 to vector<2x256xf32>
    %195 = arith.select %193, %189, %194 : vector<2x256xi1>, vector<2x256xf32>
    %196 = arith.addf %118, %195 : vector<2x256xf32>
    %cst_61 = arith.constant 0.000000e+00 : f32
    %197 = vector.broadcast %cst_61 : f32 to vector<2x256xf32>
    %c0_62 = arith.constant 0 : index
    %c0_63 = arith.constant 0 : index
    %c78_64 = arith.constant 78 : index
    %198 = vector.load %arg5[%c0_62, %c0_63, %c78_64] : memref<2x2x512xf32, #tpu.memory_space<vmem>>, vector<1x2x256xf32>
    %199 = vector.shape_cast %198 : vector<1x2x256xf32> to vector<2x256xf32>
    %200 = vector.broadcast %1 : f32 to vector<2x256xf32>
    %201 = arith.mulf %200, %199 : vector<2x256xf32>
    %202 = arith.addf %197, %201 : vector<2x256xf32>
    %c1_65 = arith.constant 1 : index
    %c0_66 = arith.constant 0 : index
    %c78_67 = arith.constant 78 : index
    %203 = vector.load %arg5[%c1_65, %c0_66, %c78_67] : memref<2x2x512xf32, #tpu.memory_space<vmem>>, vector<1x2x256xf32>
    %204 = vector.shape_cast %203 : vector<1x2x256xf32> to vector<2x256xf32>
    %205 = vector.broadcast %50 : f32 to vector<2x256xf32>
    %206 = arith.mulf %205, %204 : vector<2x256xf32>
    %207 = arith.addf %202, %206 : vector<2x256xf32>
    %c0_68 = arith.constant 0 : index
    %c0_69 = arith.constant 0 : index
    %c94_70 = arith.constant 94 : index
    %208 = vector.load %arg5[%c0_68, %c0_69, %c94_70] : memref<2x2x512xf32, #tpu.memory_space<vmem>>, vector<1x2x256xf32>
    %209 = vector.shape_cast %208 : vector<1x2x256xf32> to vector<2x256xf32>
    %210 = vector.broadcast %8 : f32 to vector<2x256xf32>
    %211 = arith.mulf %210, %209 : vector<2x256xf32>
    %212 = arith.addf %207, %211 : vector<2x256xf32>
    %c1_71 = arith.constant 1 : index
    %c0_72 = arith.constant 0 : index
    %c94_73 = arith.constant 94 : index
    %213 = vector.load %arg5[%c1_71, %c0_72, %c94_73] : memref<2x2x512xf32, #tpu.memory_space<vmem>>, vector<1x2x256xf32>
    %214 = vector.shape_cast %213 : vector<1x2x256xf32> to vector<2x256xf32>
    %215 = vector.broadcast %57 : f32 to vector<2x256xf32>
    %216 = arith.mulf %215, %214 : vector<2x256xf32>
    %217 = arith.addf %212, %216 : vector<2x256xf32>
    %c0_74 = arith.constant 0 : index
    %c0_75 = arith.constant 0 : index
    %c110 = arith.constant 110 : index
    %218 = vector.load %arg5[%c0_74, %c0_75, %c110] : memref<2x2x512xf32, #tpu.memory_space<vmem>>, vector<1x2x256xf32>
    %219 = vector.shape_cast %218 : vector<1x2x256xf32> to vector<2x256xf32>
    %220 = vector.broadcast %15 : f32 to vector<2x256xf32>
    %221 = arith.mulf %220, %219 : vector<2x256xf32>
    %222 = arith.addf %217, %221 : vector<2x256xf32>
    %c1_76 = arith.constant 1 : index
    %c0_77 = arith.constant 0 : index
    %c110_78 = arith.constant 110 : index
    %223 = vector.load %arg5[%c1_76, %c0_77, %c110_78] : memref<2x2x512xf32, #tpu.memory_space<vmem>>, vector<1x2x256xf32>
    %224 = vector.shape_cast %223 : vector<1x2x256xf32> to vector<2x256xf32>
    %225 = vector.broadcast %64 : f32 to vector<2x256xf32>
    %226 = arith.mulf %225, %224 : vector<2x256xf32>
    %227 = arith.addf %222, %226 : vector<2x256xf32>
    %c0_79 = arith.constant 0 : index
    %c0_80 = arith.constant 0 : index
    %c126 = arith.constant 126 : index
    %228 = vector.load %arg5[%c0_79, %c0_80, %c126] : memref<2x2x512xf32, #tpu.memory_space<vmem>>, vector<1x2x256xf32>
    %229 = vector.shape_cast %228 : vector<1x2x256xf32> to vector<2x256xf32>
    %230 = vector.broadcast %22 : f32 to vector<2x256xf32>
    %231 = arith.mulf %230, %229 : vector<2x256xf32>
    %232 = arith.addf %227, %231 : vector<2x256xf32>
    %c1_81 = arith.constant 1 : index
    %c0_82 = arith.constant 0 : index
    %c126_83 = arith.constant 126 : index
    %233 = vector.load %arg5[%c1_81, %c0_82, %c126_83] : memref<2x2x512xf32, #tpu.memory_space<vmem>>, vector<1x2x256xf32>
    %234 = vector.shape_cast %233 : vector<1x2x256xf32> to vector<2x256xf32>
    %235 = vector.broadcast %71 : f32 to vector<2x256xf32>
    %236 = arith.mulf %235, %234 : vector<2x256xf32>
    %237 = arith.addf %232, %236 : vector<2x256xf32>
    %c0_84 = arith.constant 0 : index
    %c0_85 = arith.constant 0 : index
    %c142 = arith.constant 142 : index
    %238 = vector.load %arg5[%c0_84, %c0_85, %c142] : memref<2x2x512xf32, #tpu.memory_space<vmem>>, vector<1x2x256xf32>
    %239 = vector.shape_cast %238 : vector<1x2x256xf32> to vector<2x256xf32>
    %240 = vector.broadcast %29 : f32 to vector<2x256xf32>
    %241 = arith.mulf %240, %239 : vector<2x256xf32>
    %242 = arith.addf %237, %241 : vector<2x256xf32>
    %c1_86 = arith.constant 1 : index
    %c0_87 = arith.constant 0 : index
    %c142_88 = arith.constant 142 : index
    %243 = vector.load %arg5[%c1_86, %c0_87, %c142_88] : memref<2x2x512xf32, #tpu.memory_space<vmem>>, vector<1x2x256xf32>
    %244 = vector.shape_cast %243 : vector<1x2x256xf32> to vector<2x256xf32>
    %245 = vector.broadcast %78 : f32 to vector<2x256xf32>
    %246 = arith.mulf %245, %244 : vector<2x256xf32>
    %247 = arith.addf %242, %246 : vector<2x256xf32>
    %c0_89 = arith.constant 0 : index
    %c0_90 = arith.constant 0 : index
    %c158 = arith.constant 158 : index
    %248 = vector.load %arg5[%c0_89, %c0_90, %c158] : memref<2x2x512xf32, #tpu.memory_space<vmem>>, vector<1x2x256xf32>
    %249 = vector.shape_cast %248 : vector<1x2x256xf32> to vector<2x256xf32>
    %250 = vector.broadcast %36 : f32 to vector<2x256xf32>
    %251 = arith.mulf %250, %249 : vector<2x256xf32>
    %252 = arith.addf %247, %251 : vector<2x256xf32>
    %c1_91 = arith.constant 1 : index
    %c0_92 = arith.constant 0 : index
    %c158_93 = arith.constant 158 : index
    %253 = vector.load %arg5[%c1_91, %c0_92, %c158_93] : memref<2x2x512xf32, #tpu.memory_space<vmem>>, vector<1x2x256xf32>
    %254 = vector.shape_cast %253 : vector<1x2x256xf32> to vector<2x256xf32>
    %255 = vector.broadcast %85 : f32 to vector<2x256xf32>
    %256 = arith.mulf %255, %254 : vector<2x256xf32>
    %257 = arith.addf %252, %256 : vector<2x256xf32>
    %c0_94 = arith.constant 0 : index
    %c0_95 = arith.constant 0 : index
    %c174 = arith.constant 174 : index
    %258 = vector.load %arg5[%c0_94, %c0_95, %c174] : memref<2x2x512xf32, #tpu.memory_space<vmem>>, vector<1x2x256xf32>
    %259 = vector.shape_cast %258 : vector<1x2x256xf32> to vector<2x256xf32>
    %260 = vector.broadcast %43 : f32 to vector<2x256xf32>
    %261 = arith.mulf %260, %259 : vector<2x256xf32>
    %262 = arith.addf %257, %261 : vector<2x256xf32>
    %c1_96 = arith.constant 1 : index
    %c0_97 = arith.constant 0 : index
    %c174_98 = arith.constant 174 : index
    %263 = vector.load %arg5[%c1_96, %c0_97, %c174_98] : memref<2x2x512xf32, #tpu.memory_space<vmem>>, vector<1x2x256xf32>
    %264 = vector.shape_cast %263 : vector<1x2x256xf32> to vector<2x256xf32>
    %265 = vector.broadcast %92 : f32 to vector<2x256xf32>
    %266 = arith.mulf %265, %264 : vector<2x256xf32>
    %267 = arith.addf %262, %266 : vector<2x256xf32>
    %c2_i32 = arith.constant 2 : i32
    %268 = vector.broadcast %c2_i32 : i32 to vector<1x256xi32>
    %269 = arith.cmpi sge, %117, %268 : vector<1x256xi32>
    %cst_99 = arith.constant 0.000000e+00 : f32
    %270 = vector.shape_cast %269 : vector<1x256xi1> to vector<1x256xi1>
    %271 = vector.broadcast %270 : vector<1x256xi1> to vector<2x256xi1>
    %272 = vector.broadcast %cst_99 : f32 to vector<2x256xf32>
    %273 = arith.select %271, %267, %272 : vector<2x256xi1>, vector<2x256xf32>
    %274 = arith.addf %196, %273 : vector<2x256xf32>
    %cst_100 = arith.constant 0.000000e+00 : f32
    %275 = vector.broadcast %cst_100 : f32 to vector<2x256xf32>
    %c0_101 = arith.constant 0 : index
    %c0_102 = arith.constant 0 : index
    %c79_103 = arith.constant 79 : index
    %276 = vector.load %arg5[%c0_101, %c0_102, %c79_103] : memref<2x2x512xf32, #tpu.memory_space<vmem>>, vector<1x2x256xf32>
    %277 = vector.shape_cast %276 : vector<1x2x256xf32> to vector<2x256xf32>
    %278 = vector.broadcast %2 : f32 to vector<2x256xf32>
    %279 = arith.mulf %278, %277 : vector<2x256xf32>
    %280 = arith.addf %275, %279 : vector<2x256xf32>
    %c1_104 = arith.constant 1 : index
    %c0_105 = arith.constant 0 : index
    %c79_106 = arith.constant 79 : index
    %281 = vector.load %arg5[%c1_104, %c0_105, %c79_106] : memref<2x2x512xf32, #tpu.memory_space<vmem>>, vector<1x2x256xf32>
    %282 = vector.shape_cast %281 : vector<1x2x256xf32> to vector<2x256xf32>
    %283 = vector.broadcast %51 : f32 to vector<2x256xf32>
    %284 = arith.mulf %283, %282 : vector<2x256xf32>
    %285 = arith.addf %280, %284 : vector<2x256xf32>
    %c0_107 = arith.constant 0 : index
    %c0_108 = arith.constant 0 : index
    %c95_109 = arith.constant 95 : index
    %286 = vector.load %arg5[%c0_107, %c0_108, %c95_109] : memref<2x2x512xf32, #tpu.memory_space<vmem>>, vector<1x2x256xf32>
    %287 = vector.shape_cast %286 : vector<1x2x256xf32> to vector<2x256xf32>
    %288 = vector.broadcast %9 : f32 to vector<2x256xf32>
    %289 = arith.mulf %288, %287 : vector<2x256xf32>
    %290 = arith.addf %285, %289 : vector<2x256xf32>
    %c1_110 = arith.constant 1 : index
    %c0_111 = arith.constant 0 : index
    %c95_112 = arith.constant 95 : index
    %291 = vector.load %arg5[%c1_110, %c0_111, %c95_112] : memref<2x2x512xf32, #tpu.memory_space<vmem>>, vector<1x2x256xf32>
    %292 = vector.shape_cast %291 : vector<1x2x256xf32> to vector<2x256xf32>
    %293 = vector.broadcast %58 : f32 to vector<2x256xf32>
    %294 = arith.mulf %293, %292 : vector<2x256xf32>
    %295 = arith.addf %290, %294 : vector<2x256xf32>
    %c0_113 = arith.constant 0 : index
    %c0_114 = arith.constant 0 : index
    %c111 = arith.constant 111 : index
    %296 = vector.load %arg5[%c0_113, %c0_114, %c111] : memref<2x2x512xf32, #tpu.memory_space<vmem>>, vector<1x2x256xf32>
    %297 = vector.shape_cast %296 : vector<1x2x256xf32> to vector<2x256xf32>
    %298 = vector.broadcast %16 : f32 to vector<2x256xf32>
    %299 = arith.mulf %298, %297 : vector<2x256xf32>
    %300 = arith.addf %295, %299 : vector<2x256xf32>
    %c1_115 = arith.constant 1 : index
    %c0_116 = arith.constant 0 : index
    %c111_117 = arith.constant 111 : index
    %301 = vector.load %arg5[%c1_115, %c0_116, %c111_117] : memref<2x2x512xf32, #tpu.memory_space<vmem>>, vector<1x2x256xf32>
    %302 = vector.shape_cast %301 : vector<1x2x256xf32> to vector<2x256xf32>
    %303 = vector.broadcast %65 : f32 to vector<2x256xf32>
    %304 = arith.mulf %303, %302 : vector<2x256xf32>
    %305 = arith.addf %300, %304 : vector<2x256xf32>
    %c0_118 = arith.constant 0 : index
    %c0_119 = arith.constant 0 : index
    %c127 = arith.constant 127 : index
    %306 = vector.load %arg5[%c0_118, %c0_119, %c127] : memref<2x2x512xf32, #tpu.memory_space<vmem>>, vector<1x2x256xf32>
    %307 = vector.shape_cast %306 : vector<1x2x256xf32> to vector<2x256xf32>
    %308 = vector.broadcast %23 : f32 to vector<2x256xf32>
    %309 = arith.mulf %308, %307 : vector<2x256xf32>
    %310 = arith.addf %305, %309 : vector<2x256xf32>
    %c1_120 = arith.constant 1 : index
    %c0_121 = arith.constant 0 : index
    %c127_122 = arith.constant 127 : index
    %311 = vector.load %arg5[%c1_120, %c0_121, %c127_122] : memref<2x2x512xf32, #tpu.memory_space<vmem>>, vector<1x2x256xf32>
    %312 = vector.shape_cast %311 : vector<1x2x256xf32> to vector<2x256xf32>
    %313 = vector.broadcast %72 : f32 to vector<2x256xf32>
    %314 = arith.mulf %313, %312 : vector<2x256xf32>
    %315 = arith.addf %310, %314 : vector<2x256xf32>
    %c0_123 = arith.constant 0 : index
    %c0_124 = arith.constant 0 : index
    %c143 = arith.constant 143 : index
    %316 = vector.load %arg5[%c0_123, %c0_124, %c143] : memref<2x2x512xf32, #tpu.memory_space<vmem>>, vector<1x2x256xf32>
    %317 = vector.shape_cast %316 : vector<1x2x256xf32> to vector<2x256xf32>
    %318 = vector.broadcast %30 : f32 to vector<2x256xf32>
    %319 = arith.mulf %318, %317 : vector<2x256xf32>
    %320 = arith.addf %315, %319 : vector<2x256xf32>
    %c1_125 = arith.constant 1 : index
    %c0_126 = arith.constant 0 : index
    %c143_127 = arith.constant 143 : index
    %321 = vector.load %arg5[%c1_125, %c0_126, %c143_127] : memref<2x2x512xf32, #tpu.memory_space<vmem>>, vector<1x2x256xf32>
    %322 = vector.shape_cast %321 : vector<1x2x256xf32> to vector<2x256xf32>
    %323 = vector.broadcast %79 : f32 to vector<2x256xf32>
    %324 = arith.mulf %323, %322 : vector<2x256xf32>
    %325 = arith.addf %320, %324 : vector<2x256xf32>
    %c0_128 = arith.constant 0 : index
    %c0_129 = arith.constant 0 : index
    %c159 = arith.constant 159 : index
    %326 = vector.load %arg5[%c0_128, %c0_129, %c159] : memref<2x2x512xf32, #tpu.memory_space<vmem>>, vector<1x2x256xf32>
    %327 = vector.shape_cast %326 : vector<1x2x256xf32> to vector<2x256xf32>
    %328 = vector.broadcast %37 : f32 to vector<2x256xf32>
    %329 = arith.mulf %328, %327 : vector<2x256xf32>
    %330 = arith.addf %325, %329 : vector<2x256xf32>
    %c1_130 = arith.constant 1 : index
    %c0_131 = arith.constant 0 : index
    %c159_132 = arith.constant 159 : index
    %331 = vector.load %arg5[%c1_130, %c0_131, %c159_132] : memref<2x2x512xf32, #tpu.memory_space<vmem>>, vector<1x2x256xf32>
    %332 = vector.shape_cast %331 : vector<1x2x256xf32> to vector<2x256xf32>
    %333 = vector.broadcast %86 : f32 to vector<2x256xf32>
    %334 = arith.mulf %333, %332 : vector<2x256xf32>
    %335 = arith.addf %330, %334 : vector<2x256xf32>
    %c0_133 = arith.constant 0 : index
    %c0_134 = arith.constant 0 : index
    %c175 = arith.constant 175 : index
    %336 = vector.load %arg5[%c0_133, %c0_134, %c175] : memref<2x2x512xf32, #tpu.memory_space<vmem>>, vector<1x2x256xf32>
    %337 = vector.shape_cast %336 : vector<1x2x256xf32> to vector<2x256xf32>
    %338 = vector.broadcast %44 : f32 to vector<2x256xf32>
    %339 = arith.mulf %338, %337 : vector<2x256xf32>
    %340 = arith.addf %335, %339 : vector<2x256xf32>
    %c1_135 = arith.constant 1 : index
    %c0_136 = arith.constant 0 : index
    %c175_137 = arith.constant 175 : index
    %341 = vector.load %arg5[%c1_135, %c0_136, %c175_137] : memref<2x2x512xf32, #tpu.memory_space<vmem>>, vector<1x2x256xf32>
    %342 = vector.shape_cast %341 : vector<1x2x256xf32> to vector<2x256xf32>
    %343 = vector.broadcast %93 : f32 to vector<2x256xf32>
    %344 = arith.mulf %343, %342 : vector<2x256xf32>
    %345 = arith.addf %340, %344 : vector<2x256xf32>
    %c1_i32 = arith.constant 1 : i32
    %346 = vector.broadcast %c1_i32 : i32 to vector<1x256xi32>
    %347 = arith.cmpi sge, %117, %346 : vector<1x256xi32>
    %cst_138 = arith.constant 0.000000e+00 : f32
    %348 = vector.shape_cast %347 : vector<1x256xi1> to vector<1x256xi1>
    %349 = vector.broadcast %348 : vector<1x256xi1> to vector<2x256xi1>
    %350 = vector.broadcast %cst_138 : f32 to vector<2x256xf32>
    %351 = arith.select %349, %345, %350 : vector<2x256xi1>, vector<2x256xf32>
    %352 = arith.addf %274, %351 : vector<2x256xf32>
    %cst_139 = arith.constant 0.000000e+00 : f32
    %353 = vector.broadcast %cst_139 : f32 to vector<2x256xf32>
    %c0_140 = arith.constant 0 : index
    %c0_141 = arith.constant 0 : index
    %c80_142 = arith.constant 80 : index
    %354 = vector.load %arg5[%c0_140, %c0_141, %c80_142] : memref<2x2x512xf32, #tpu.memory_space<vmem>>, vector<1x2x256xf32>
    %355 = vector.shape_cast %354 : vector<1x2x256xf32> to vector<2x256xf32>
    %356 = vector.broadcast %3 : f32 to vector<2x256xf32>
    %357 = arith.mulf %356, %355 : vector<2x256xf32>
    %358 = arith.addf %353, %357 : vector<2x256xf32>
    %c1_143 = arith.constant 1 : index
    %c0_144 = arith.constant 0 : index
    %c80_145 = arith.constant 80 : index
    %359 = vector.load %arg5[%c1_143, %c0_144, %c80_145] : memref<2x2x512xf32, #tpu.memory_space<vmem>>, vector<1x2x256xf32>
    %360 = vector.shape_cast %359 : vector<1x2x256xf32> to vector<2x256xf32>
    %361 = vector.broadcast %52 : f32 to vector<2x256xf32>
    %362 = arith.mulf %361, %360 : vector<2x256xf32>
    %363 = arith.addf %358, %362 : vector<2x256xf32>
    %c0_146 = arith.constant 0 : index
    %c0_147 = arith.constant 0 : index
    %c96_148 = arith.constant 96 : index
    %364 = vector.load %arg5[%c0_146, %c0_147, %c96_148] : memref<2x2x512xf32, #tpu.memory_space<vmem>>, vector<1x2x256xf32>
    %365 = vector.shape_cast %364 : vector<1x2x256xf32> to vector<2x256xf32>
    %366 = vector.broadcast %10 : f32 to vector<2x256xf32>
    %367 = arith.mulf %366, %365 : vector<2x256xf32>
    %368 = arith.addf %363, %367 : vector<2x256xf32>
    %c1_149 = arith.constant 1 : index
    %c0_150 = arith.constant 0 : index
    %c96_151 = arith.constant 96 : index
    %369 = vector.load %arg5[%c1_149, %c0_150, %c96_151] : memref<2x2x512xf32, #tpu.memory_space<vmem>>, vector<1x2x256xf32>
    %370 = vector.shape_cast %369 : vector<1x2x256xf32> to vector<2x256xf32>
    %371 = vector.broadcast %59 : f32 to vector<2x256xf32>
    %372 = arith.mulf %371, %370 : vector<2x256xf32>
    %373 = arith.addf %368, %372 : vector<2x256xf32>
    %c0_152 = arith.constant 0 : index
    %c0_153 = arith.constant 0 : index
    %c112 = arith.constant 112 : index
    %374 = vector.load %arg5[%c0_152, %c0_153, %c112] : memref<2x2x512xf32, #tpu.memory_space<vmem>>, vector<1x2x256xf32>
    %375 = vector.shape_cast %374 : vector<1x2x256xf32> to vector<2x256xf32>
    %376 = vector.broadcast %17 : f32 to vector<2x256xf32>
    %377 = arith.mulf %376, %375 : vector<2x256xf32>
    %378 = arith.addf %373, %377 : vector<2x256xf32>
    %c1_154 = arith.constant 1 : index
    %c0_155 = arith.constant 0 : index
    %c112_156 = arith.constant 112 : index
    %379 = vector.load %arg5[%c1_154, %c0_155, %c112_156] : memref<2x2x512xf32, #tpu.memory_space<vmem>>, vector<1x2x256xf32>
    %380 = vector.shape_cast %379 : vector<1x2x256xf32> to vector<2x256xf32>
    %381 = vector.broadcast %66 : f32 to vector<2x256xf32>
    %382 = arith.mulf %381, %380 : vector<2x256xf32>
    %383 = arith.addf %378, %382 : vector<2x256xf32>
    %c0_157 = arith.constant 0 : index
    %c0_158 = arith.constant 0 : index
    %c128_159 = arith.constant 128 : index
    %384 = vector.load %arg5[%c0_157, %c0_158, %c128_159] : memref<2x2x512xf32, #tpu.memory_space<vmem>>, vector<1x2x256xf32>
    %385 = vector.shape_cast %384 : vector<1x2x256xf32> to vector<2x256xf32>
    %386 = vector.broadcast %24 : f32 to vector<2x256xf32>
    %387 = arith.mulf %386, %385 : vector<2x256xf32>
    %388 = arith.addf %383, %387 : vector<2x256xf32>
    %c1_160 = arith.constant 1 : index
    %c0_161 = arith.constant 0 : index
    %c128_162 = arith.constant 128 : index
    %389 = vector.load %arg5[%c1_160, %c0_161, %c128_162] : memref<2x2x512xf32, #tpu.memory_space<vmem>>, vector<1x2x256xf32>
    %390 = vector.shape_cast %389 : vector<1x2x256xf32> to vector<2x256xf32>
    %391 = vector.broadcast %73 : f32 to vector<2x256xf32>
    %392 = arith.mulf %391, %390 : vector<2x256xf32>
    %393 = arith.addf %388, %392 : vector<2x256xf32>
    %c0_163 = arith.constant 0 : index
    %c0_164 = arith.constant 0 : index
    %c144 = arith.constant 144 : index
    %394 = vector.load %arg5[%c0_163, %c0_164, %c144] : memref<2x2x512xf32, #tpu.memory_space<vmem>>, vector<1x2x256xf32>
    %395 = vector.shape_cast %394 : vector<1x2x256xf32> to vector<2x256xf32>
    %396 = vector.broadcast %31 : f32 to vector<2x256xf32>
    %397 = arith.mulf %396, %395 : vector<2x256xf32>
    %398 = arith.addf %393, %397 : vector<2x256xf32>
    %c1_165 = arith.constant 1 : index
    %c0_166 = arith.constant 0 : index
    %c144_167 = arith.constant 144 : index
    %399 = vector.load %arg5[%c1_165, %c0_166, %c144_167] : memref<2x2x512xf32, #tpu.memory_space<vmem>>, vector<1x2x256xf32>
    %400 = vector.shape_cast %399 : vector<1x2x256xf32> to vector<2x256xf32>
    %401 = vector.broadcast %80 : f32 to vector<2x256xf32>
    %402 = arith.mulf %401, %400 : vector<2x256xf32>
    %403 = arith.addf %398, %402 : vector<2x256xf32>
    %c0_168 = arith.constant 0 : index
    %c0_169 = arith.constant 0 : index
    %c160 = arith.constant 160 : index
    %404 = vector.load %arg5[%c0_168, %c0_169, %c160] : memref<2x2x512xf32, #tpu.memory_space<vmem>>, vector<1x2x256xf32>
    %405 = vector.shape_cast %404 : vector<1x2x256xf32> to vector<2x256xf32>
    %406 = vector.broadcast %38 : f32 to vector<2x256xf32>
    %407 = arith.mulf %406, %405 : vector<2x256xf32>
    %408 = arith.addf %403, %407 : vector<2x256xf32>
    %c1_170 = arith.constant 1 : index
    %c0_171 = arith.constant 0 : index
    %c160_172 = arith.constant 160 : index
    %409 = vector.load %arg5[%c1_170, %c0_171, %c160_172] : memref<2x2x512xf32, #tpu.memory_space<vmem>>, vector<1x2x256xf32>
    %410 = vector.shape_cast %409 : vector<1x2x256xf32> to vector<2x256xf32>
    %411 = vector.broadcast %87 : f32 to vector<2x256xf32>
    %412 = arith.mulf %411, %410 : vector<2x256xf32>
    %413 = arith.addf %408, %412 : vector<2x256xf32>
    %c0_173 = arith.constant 0 : index
    %c0_174 = arith.constant 0 : index
    %c176 = arith.constant 176 : index
    %414 = vector.load %arg5[%c0_173, %c0_174, %c176] : memref<2x2x512xf32, #tpu.memory_space<vmem>>, vector<1x2x256xf32>
    %415 = vector.shape_cast %414 : vector<1x2x256xf32> to vector<2x256xf32>
    %416 = vector.broadcast %45 : f32 to vector<2x256xf32>
    %417 = arith.mulf %416, %415 : vector<2x256xf32>
    %418 = arith.addf %413, %417 : vector<2x256xf32>
    %c1_175 = arith.constant 1 : index
    %c0_176 = arith.constant 0 : index
    %c176_177 = arith.constant 176 : index
    %419 = vector.load %arg5[%c1_175, %c0_176, %c176_177] : memref<2x2x512xf32, #tpu.memory_space<vmem>>, vector<1x2x256xf32>
    %420 = vector.shape_cast %419 : vector<1x2x256xf32> to vector<2x256xf32>
    %421 = vector.broadcast %94 : f32 to vector<2x256xf32>
    %422 = arith.mulf %421, %420 : vector<2x256xf32>
    %423 = arith.addf %418, %422 : vector<2x256xf32>
    %424 = arith.addf %352, %423 : vector<2x256xf32>
    %cst_178 = arith.constant 0.000000e+00 : f32
    %425 = vector.broadcast %cst_178 : f32 to vector<2x256xf32>
    %c0_179 = arith.constant 0 : index
    %c0_180 = arith.constant 0 : index
    %c81_181 = arith.constant 81 : index
    %426 = vector.load %arg5[%c0_179, %c0_180, %c81_181] : memref<2x2x512xf32, #tpu.memory_space<vmem>>, vector<1x2x256xf32>
    %427 = vector.shape_cast %426 : vector<1x2x256xf32> to vector<2x256xf32>
    %428 = vector.broadcast %4 : f32 to vector<2x256xf32>
    %429 = arith.mulf %428, %427 : vector<2x256xf32>
    %430 = arith.addf %425, %429 : vector<2x256xf32>
    %c1_182 = arith.constant 1 : index
    %c0_183 = arith.constant 0 : index
    %c81_184 = arith.constant 81 : index
    %431 = vector.load %arg5[%c1_182, %c0_183, %c81_184] : memref<2x2x512xf32, #tpu.memory_space<vmem>>, vector<1x2x256xf32>
    %432 = vector.shape_cast %431 : vector<1x2x256xf32> to vector<2x256xf32>
    %433 = vector.broadcast %53 : f32 to vector<2x256xf32>
    %434 = arith.mulf %433, %432 : vector<2x256xf32>
    %435 = arith.addf %430, %434 : vector<2x256xf32>
    %c0_185 = arith.constant 0 : index
    %c0_186 = arith.constant 0 : index
    %c97_187 = arith.constant 97 : index
    %436 = vector.load %arg5[%c0_185, %c0_186, %c97_187] : memref<2x2x512xf32, #tpu.memory_space<vmem>>, vector<1x2x256xf32>
    %437 = vector.shape_cast %436 : vector<1x2x256xf32> to vector<2x256xf32>
    %438 = vector.broadcast %11 : f32 to vector<2x256xf32>
    %439 = arith.mulf %438, %437 : vector<2x256xf32>
    %440 = arith.addf %435, %439 : vector<2x256xf32>
    %c1_188 = arith.constant 1 : index
    %c0_189 = arith.constant 0 : index
    %c97_190 = arith.constant 97 : index
    %441 = vector.load %arg5[%c1_188, %c0_189, %c97_190] : memref<2x2x512xf32, #tpu.memory_space<vmem>>, vector<1x2x256xf32>
    %442 = vector.shape_cast %441 : vector<1x2x256xf32> to vector<2x256xf32>
    %443 = vector.broadcast %60 : f32 to vector<2x256xf32>
    %444 = arith.mulf %443, %442 : vector<2x256xf32>
    %445 = arith.addf %440, %444 : vector<2x256xf32>
    %c0_191 = arith.constant 0 : index
    %c0_192 = arith.constant 0 : index
    %c113 = arith.constant 113 : index
    %446 = vector.load %arg5[%c0_191, %c0_192, %c113] : memref<2x2x512xf32, #tpu.memory_space<vmem>>, vector<1x2x256xf32>
    %447 = vector.shape_cast %446 : vector<1x2x256xf32> to vector<2x256xf32>
    %448 = vector.broadcast %18 : f32 to vector<2x256xf32>
    %449 = arith.mulf %448, %447 : vector<2x256xf32>
    %450 = arith.addf %445, %449 : vector<2x256xf32>
    %c1_193 = arith.constant 1 : index
    %c0_194 = arith.constant 0 : index
    %c113_195 = arith.constant 113 : index
    %451 = vector.load %arg5[%c1_193, %c0_194, %c113_195] : memref<2x2x512xf32, #tpu.memory_space<vmem>>, vector<1x2x256xf32>
    %452 = vector.shape_cast %451 : vector<1x2x256xf32> to vector<2x256xf32>
    %453 = vector.broadcast %67 : f32 to vector<2x256xf32>
    %454 = arith.mulf %453, %452 : vector<2x256xf32>
    %455 = arith.addf %450, %454 : vector<2x256xf32>
    %c0_196 = arith.constant 0 : index
    %c0_197 = arith.constant 0 : index
    %c129 = arith.constant 129 : index
    %456 = vector.load %arg5[%c0_196, %c0_197, %c129] : memref<2x2x512xf32, #tpu.memory_space<vmem>>, vector<1x2x256xf32>
    %457 = vector.shape_cast %456 : vector<1x2x256xf32> to vector<2x256xf32>
    %458 = vector.broadcast %25 : f32 to vector<2x256xf32>
    %459 = arith.mulf %458, %457 : vector<2x256xf32>
    %460 = arith.addf %455, %459 : vector<2x256xf32>
    %c1_198 = arith.constant 1 : index
    %c0_199 = arith.constant 0 : index
    %c129_200 = arith.constant 129 : index
    %461 = vector.load %arg5[%c1_198, %c0_199, %c129_200] : memref<2x2x512xf32, #tpu.memory_space<vmem>>, vector<1x2x256xf32>
    %462 = vector.shape_cast %461 : vector<1x2x256xf32> to vector<2x256xf32>
    %463 = vector.broadcast %74 : f32 to vector<2x256xf32>
    %464 = arith.mulf %463, %462 : vector<2x256xf32>
    %465 = arith.addf %460, %464 : vector<2x256xf32>
    %c0_201 = arith.constant 0 : index
    %c0_202 = arith.constant 0 : index
    %c145 = arith.constant 145 : index
    %466 = vector.load %arg5[%c0_201, %c0_202, %c145] : memref<2x2x512xf32, #tpu.memory_space<vmem>>, vector<1x2x256xf32>
    %467 = vector.shape_cast %466 : vector<1x2x256xf32> to vector<2x256xf32>
    %468 = vector.broadcast %32 : f32 to vector<2x256xf32>
    %469 = arith.mulf %468, %467 : vector<2x256xf32>
    %470 = arith.addf %465, %469 : vector<2x256xf32>
    %c1_203 = arith.constant 1 : index
    %c0_204 = arith.constant 0 : index
    %c145_205 = arith.constant 145 : index
    %471 = vector.load %arg5[%c1_203, %c0_204, %c145_205] : memref<2x2x512xf32, #tpu.memory_space<vmem>>, vector<1x2x256xf32>
    %472 = vector.shape_cast %471 : vector<1x2x256xf32> to vector<2x256xf32>
    %473 = vector.broadcast %81 : f32 to vector<2x256xf32>
    %474 = arith.mulf %473, %472 : vector<2x256xf32>
    %475 = arith.addf %470, %474 : vector<2x256xf32>
    %c0_206 = arith.constant 0 : index
    %c0_207 = arith.constant 0 : index
    %c161 = arith.constant 161 : index
    %476 = vector.load %arg5[%c0_206, %c0_207, %c161] : memref<2x2x512xf32, #tpu.memory_space<vmem>>, vector<1x2x256xf32>
    %477 = vector.shape_cast %476 : vector<1x2x256xf32> to vector<2x256xf32>
    %478 = vector.broadcast %39 : f32 to vector<2x256xf32>
    %479 = arith.mulf %478, %477 : vector<2x256xf32>
    %480 = arith.addf %475, %479 : vector<2x256xf32>
    %c1_208 = arith.constant 1 : index
    %c0_209 = arith.constant 0 : index
    %c161_210 = arith.constant 161 : index
    %481 = vector.load %arg5[%c1_208, %c0_209, %c161_210] : memref<2x2x512xf32, #tpu.memory_space<vmem>>, vector<1x2x256xf32>
    %482 = vector.shape_cast %481 : vector<1x2x256xf32> to vector<2x256xf32>
    %483 = vector.broadcast %88 : f32 to vector<2x256xf32>
    %484 = arith.mulf %483, %482 : vector<2x256xf32>
    %485 = arith.addf %480, %484 : vector<2x256xf32>
    %c0_211 = arith.constant 0 : index
    %c0_212 = arith.constant 0 : index
    %c177 = arith.constant 177 : index
    %486 = vector.load %arg5[%c0_211, %c0_212, %c177] : memref<2x2x512xf32, #tpu.memory_space<vmem>>, vector<1x2x256xf32>
    %487 = vector.shape_cast %486 : vector<1x2x256xf32> to vector<2x256xf32>
    %488 = vector.broadcast %46 : f32 to vector<2x256xf32>
    %489 = arith.mulf %488, %487 : vector<2x256xf32>
    %490 = arith.addf %485, %489 : vector<2x256xf32>
    %c1_213 = arith.constant 1 : index
    %c0_214 = arith.constant 0 : index
    %c177_215 = arith.constant 177 : index
    %491 = vector.load %arg5[%c1_213, %c0_214, %c177_215] : memref<2x2x512xf32, #tpu.memory_space<vmem>>, vector<1x2x256xf32>
    %492 = vector.shape_cast %491 : vector<1x2x256xf32> to vector<2x256xf32>
    %493 = vector.broadcast %95 : f32 to vector<2x256xf32>
    %494 = arith.mulf %493, %492 : vector<2x256xf32>
    %495 = arith.addf %490, %494 : vector<2x256xf32>
    %c15_i32 = arith.constant 15 : i32
    %496 = vector.broadcast %c15_i32 : i32 to vector<1x256xi32>
    %497 = arith.cmpi slt, %117, %496 : vector<1x256xi32>
    %cst_216 = arith.constant 0.000000e+00 : f32
    %498 = vector.shape_cast %497 : vector<1x256xi1> to vector<1x256xi1>
    %499 = vector.broadcast %498 : vector<1x256xi1> to vector<2x256xi1>
    %500 = vector.broadcast %cst_216 : f32 to vector<2x256xf32>
    %501 = arith.select %499, %495, %500 : vector<2x256xi1>, vector<2x256xf32>
    %502 = arith.addf %424, %501 : vector<2x256xf32>
    %cst_217 = arith.constant 0.000000e+00 : f32
    %503 = vector.broadcast %cst_217 : f32 to vector<2x256xf32>
    %c0_218 = arith.constant 0 : index
    %c0_219 = arith.constant 0 : index
    %c82_220 = arith.constant 82 : index
    %504 = vector.load %arg5[%c0_218, %c0_219, %c82_220] : memref<2x2x512xf32, #tpu.memory_space<vmem>>, vector<1x2x256xf32>
    %505 = vector.shape_cast %504 : vector<1x2x256xf32> to vector<2x256xf32>
    %506 = vector.broadcast %5 : f32 to vector<2x256xf32>
    %507 = arith.mulf %506, %505 : vector<2x256xf32>
    %508 = arith.addf %503, %507 : vector<2x256xf32>
    %c1_221 = arith.constant 1 : index
    %c0_222 = arith.constant 0 : index
    %c82_223 = arith.constant 82 : index
    %509 = vector.load %arg5[%c1_221, %c0_222, %c82_223] : memref<2x2x512xf32, #tpu.memory_space<vmem>>, vector<1x2x256xf32>
    %510 = vector.shape_cast %509 : vector<1x2x256xf32> to vector<2x256xf32>
    %511 = vector.broadcast %54 : f32 to vector<2x256xf32>
    %512 = arith.mulf %511, %510 : vector<2x256xf32>
    %513 = arith.addf %508, %512 : vector<2x256xf32>
    %c0_224 = arith.constant 0 : index
    %c0_225 = arith.constant 0 : index
    %c98 = arith.constant 98 : index
    %514 = vector.load %arg5[%c0_224, %c0_225, %c98] : memref<2x2x512xf32, #tpu.memory_space<vmem>>, vector<1x2x256xf32>
    %515 = vector.shape_cast %514 : vector<1x2x256xf32> to vector<2x256xf32>
    %516 = vector.broadcast %12 : f32 to vector<2x256xf32>
    %517 = arith.mulf %516, %515 : vector<2x256xf32>
    %518 = arith.addf %513, %517 : vector<2x256xf32>
    %c1_226 = arith.constant 1 : index
    %c0_227 = arith.constant 0 : index
    %c98_228 = arith.constant 98 : index
    %519 = vector.load %arg5[%c1_226, %c0_227, %c98_228] : memref<2x2x512xf32, #tpu.memory_space<vmem>>, vector<1x2x256xf32>
    %520 = vector.shape_cast %519 : vector<1x2x256xf32> to vector<2x256xf32>
    %521 = vector.broadcast %61 : f32 to vector<2x256xf32>
    %522 = arith.mulf %521, %520 : vector<2x256xf32>
    %523 = arith.addf %518, %522 : vector<2x256xf32>
    %c0_229 = arith.constant 0 : index
    %c0_230 = arith.constant 0 : index
    %c114 = arith.constant 114 : index
    %524 = vector.load %arg5[%c0_229, %c0_230, %c114] : memref<2x2x512xf32, #tpu.memory_space<vmem>>, vector<1x2x256xf32>
    %525 = vector.shape_cast %524 : vector<1x2x256xf32> to vector<2x256xf32>
    %526 = vector.broadcast %19 : f32 to vector<2x256xf32>
    %527 = arith.mulf %526, %525 : vector<2x256xf32>
    %528 = arith.addf %523, %527 : vector<2x256xf32>
    %c1_231 = arith.constant 1 : index
    %c0_232 = arith.constant 0 : index
    %c114_233 = arith.constant 114 : index
    %529 = vector.load %arg5[%c1_231, %c0_232, %c114_233] : memref<2x2x512xf32, #tpu.memory_space<vmem>>, vector<1x2x256xf32>
    %530 = vector.shape_cast %529 : vector<1x2x256xf32> to vector<2x256xf32>
    %531 = vector.broadcast %68 : f32 to vector<2x256xf32>
    %532 = arith.mulf %531, %530 : vector<2x256xf32>
    %533 = arith.addf %528, %532 : vector<2x256xf32>
    %c0_234 = arith.constant 0 : index
    %c0_235 = arith.constant 0 : index
    %c130 = arith.constant 130 : index
    %534 = vector.load %arg5[%c0_234, %c0_235, %c130] : memref<2x2x512xf32, #tpu.memory_space<vmem>>, vector<1x2x256xf32>
    %535 = vector.shape_cast %534 : vector<1x2x256xf32> to vector<2x256xf32>
    %536 = vector.broadcast %26 : f32 to vector<2x256xf32>
    %537 = arith.mulf %536, %535 : vector<2x256xf32>
    %538 = arith.addf %533, %537 : vector<2x256xf32>
    %c1_236 = arith.constant 1 : index
    %c0_237 = arith.constant 0 : index
    %c130_238 = arith.constant 130 : index
    %539 = vector.load %arg5[%c1_236, %c0_237, %c130_238] : memref<2x2x512xf32, #tpu.memory_space<vmem>>, vector<1x2x256xf32>
    %540 = vector.shape_cast %539 : vector<1x2x256xf32> to vector<2x256xf32>
    %541 = vector.broadcast %75 : f32 to vector<2x256xf32>
    %542 = arith.mulf %541, %540 : vector<2x256xf32>
    %543 = arith.addf %538, %542 : vector<2x256xf32>
    %c0_239 = arith.constant 0 : index
    %c0_240 = arith.constant 0 : index
    %c146 = arith.constant 146 : index
    %544 = vector.load %arg5[%c0_239, %c0_240, %c146] : memref<2x2x512xf32, #tpu.memory_space<vmem>>, vector<1x2x256xf32>
    %545 = vector.shape_cast %544 : vector<1x2x256xf32> to vector<2x256xf32>
    %546 = vector.broadcast %33 : f32 to vector<2x256xf32>
    %547 = arith.mulf %546, %545 : vector<2x256xf32>
    %548 = arith.addf %543, %547 : vector<2x256xf32>
    %c1_241 = arith.constant 1 : index
    %c0_242 = arith.constant 0 : index
    %c146_243 = arith.constant 146 : index
    %549 = vector.load %arg5[%c1_241, %c0_242, %c146_243] : memref<2x2x512xf32, #tpu.memory_space<vmem>>, vector<1x2x256xf32>
    %550 = vector.shape_cast %549 : vector<1x2x256xf32> to vector<2x256xf32>
    %551 = vector.broadcast %82 : f32 to vector<2x256xf32>
    %552 = arith.mulf %551, %550 : vector<2x256xf32>
    %553 = arith.addf %548, %552 : vector<2x256xf32>
    %c0_244 = arith.constant 0 : index
    %c0_245 = arith.constant 0 : index
    %c162 = arith.constant 162 : index
    %554 = vector.load %arg5[%c0_244, %c0_245, %c162] : memref<2x2x512xf32, #tpu.memory_space<vmem>>, vector<1x2x256xf32>
    %555 = vector.shape_cast %554 : vector<1x2x256xf32> to vector<2x256xf32>
    %556 = vector.broadcast %40 : f32 to vector<2x256xf32>
    %557 = arith.mulf %556, %555 : vector<2x256xf32>
    %558 = arith.addf %553, %557 : vector<2x256xf32>
    %c1_246 = arith.constant 1 : index
    %c0_247 = arith.constant 0 : index
    %c162_248 = arith.constant 162 : index
    %559 = vector.load %arg5[%c1_246, %c0_247, %c162_248] : memref<2x2x512xf32, #tpu.memory_space<vmem>>, vector<1x2x256xf32>
    %560 = vector.shape_cast %559 : vector<1x2x256xf32> to vector<2x256xf32>
    %561 = vector.broadcast %89 : f32 to vector<2x256xf32>
    %562 = arith.mulf %561, %560 : vector<2x256xf32>
    %563 = arith.addf %558, %562 : vector<2x256xf32>
    %c0_249 = arith.constant 0 : index
    %c0_250 = arith.constant 0 : index
    %c178 = arith.constant 178 : index
    %564 = vector.load %arg5[%c0_249, %c0_250, %c178] : memref<2x2x512xf32, #tpu.memory_space<vmem>>, vector<1x2x256xf32>
    %565 = vector.shape_cast %564 : vector<1x2x256xf32> to vector<2x256xf32>
    %566 = vector.broadcast %47 : f32 to vector<2x256xf32>
    %567 = arith.mulf %566, %565 : vector<2x256xf32>
    %568 = arith.addf %563, %567 : vector<2x256xf32>
    %c1_251 = arith.constant 1 : index
    %c0_252 = arith.constant 0 : index
    %c178_253 = arith.constant 178 : index
    %569 = vector.load %arg5[%c1_251, %c0_252, %c178_253] : memref<2x2x512xf32, #tpu.memory_space<vmem>>, vector<1x2x256xf32>
    %570 = vector.shape_cast %569 : vector<1x2x256xf32> to vector<2x256xf32>
    %571 = vector.broadcast %96 : f32 to vector<2x256xf32>
    %572 = arith.mulf %571, %570 : vector<2x256xf32>
    %573 = arith.addf %568, %572 : vector<2x256xf32>
    %c14_i32 = arith.constant 14 : i32
    %574 = vector.broadcast %c14_i32 : i32 to vector<1x256xi32>
    %575 = arith.cmpi slt, %117, %574 : vector<1x256xi32>
    %cst_254 = arith.constant 0.000000e+00 : f32
    %576 = vector.shape_cast %575 : vector<1x256xi1> to vector<1x256xi1>
    %577 = vector.broadcast %576 : vector<1x256xi1> to vector<2x256xi1>
    %578 = vector.broadcast %cst_254 : f32 to vector<2x256xf32>
    %579 = arith.select %577, %573, %578 : vector<2x256xi1>, vector<2x256xf32>
    %580 = arith.addf %502, %579 : vector<2x256xf32>
    %cst_255 = arith.constant 0.000000e+00 : f32
    %581 = vector.broadcast %cst_255 : f32 to vector<2x256xf32>
    %c0_256 = arith.constant 0 : index
    %c0_257 = arith.constant 0 : index
    %c83_258 = arith.constant 83 : index
    %582 = vector.load %arg5[%c0_256, %c0_257, %c83_258] : memref<2x2x512xf32, #tpu.memory_space<vmem>>, vector<1x2x256xf32>
    %583 = vector.shape_cast %582 : vector<1x2x256xf32> to vector<2x256xf32>
    %584 = vector.broadcast %6 : f32 to vector<2x256xf32>
    %585 = arith.mulf %584, %583 : vector<2x256xf32>
    %586 = arith.addf %581, %585 : vector<2x256xf32>
    %c1_259 = arith.constant 1 : index
    %c0_260 = arith.constant 0 : index
    %c83_261 = arith.constant 83 : index
    %587 = vector.load %arg5[%c1_259, %c0_260, %c83_261] : memref<2x2x512xf32, #tpu.memory_space<vmem>>, vector<1x2x256xf32>
    %588 = vector.shape_cast %587 : vector<1x2x256xf32> to vector<2x256xf32>
    %589 = vector.broadcast %55 : f32 to vector<2x256xf32>
    %590 = arith.mulf %589, %588 : vector<2x256xf32>
    %591 = arith.addf %586, %590 : vector<2x256xf32>
    %c0_262 = arith.constant 0 : index
    %c0_263 = arith.constant 0 : index
    %c99 = arith.constant 99 : index
    %592 = vector.load %arg5[%c0_262, %c0_263, %c99] : memref<2x2x512xf32, #tpu.memory_space<vmem>>, vector<1x2x256xf32>
    %593 = vector.shape_cast %592 : vector<1x2x256xf32> to vector<2x256xf32>
    %594 = vector.broadcast %13 : f32 to vector<2x256xf32>
    %595 = arith.mulf %594, %593 : vector<2x256xf32>
    %596 = arith.addf %591, %595 : vector<2x256xf32>
    %c1_264 = arith.constant 1 : index
    %c0_265 = arith.constant 0 : index
    %c99_266 = arith.constant 99 : index
    %597 = vector.load %arg5[%c1_264, %c0_265, %c99_266] : memref<2x2x512xf32, #tpu.memory_space<vmem>>, vector<1x2x256xf32>
    %598 = vector.shape_cast %597 : vector<1x2x256xf32> to vector<2x256xf32>
    %599 = vector.broadcast %62 : f32 to vector<2x256xf32>
    %600 = arith.mulf %599, %598 : vector<2x256xf32>
    %601 = arith.addf %596, %600 : vector<2x256xf32>
    %c0_267 = arith.constant 0 : index
    %c0_268 = arith.constant 0 : index
    %c115 = arith.constant 115 : index
    %602 = vector.load %arg5[%c0_267, %c0_268, %c115] : memref<2x2x512xf32, #tpu.memory_space<vmem>>, vector<1x2x256xf32>
    %603 = vector.shape_cast %602 : vector<1x2x256xf32> to vector<2x256xf32>
    %604 = vector.broadcast %20 : f32 to vector<2x256xf32>
    %605 = arith.mulf %604, %603 : vector<2x256xf32>
    %606 = arith.addf %601, %605 : vector<2x256xf32>
    %c1_269 = arith.constant 1 : index
    %c0_270 = arith.constant 0 : index
    %c115_271 = arith.constant 115 : index
    %607 = vector.load %arg5[%c1_269, %c0_270, %c115_271] : memref<2x2x512xf32, #tpu.memory_space<vmem>>, vector<1x2x256xf32>
    %608 = vector.shape_cast %607 : vector<1x2x256xf32> to vector<2x256xf32>
    %609 = vector.broadcast %69 : f32 to vector<2x256xf32>
    %610 = arith.mulf %609, %608 : vector<2x256xf32>
    %611 = arith.addf %606, %610 : vector<2x256xf32>
    %c0_272 = arith.constant 0 : index
    %c0_273 = arith.constant 0 : index
    %c131 = arith.constant 131 : index
    %612 = vector.load %arg5[%c0_272, %c0_273, %c131] : memref<2x2x512xf32, #tpu.memory_space<vmem>>, vector<1x2x256xf32>
    %613 = vector.shape_cast %612 : vector<1x2x256xf32> to vector<2x256xf32>
    %614 = vector.broadcast %27 : f32 to vector<2x256xf32>
    %615 = arith.mulf %614, %613 : vector<2x256xf32>
    %616 = arith.addf %611, %615 : vector<2x256xf32>
    %c1_274 = arith.constant 1 : index
    %c0_275 = arith.constant 0 : index
    %c131_276 = arith.constant 131 : index
    %617 = vector.load %arg5[%c1_274, %c0_275, %c131_276] : memref<2x2x512xf32, #tpu.memory_space<vmem>>, vector<1x2x256xf32>
    %618 = vector.shape_cast %617 : vector<1x2x256xf32> to vector<2x256xf32>
    %619 = vector.broadcast %76 : f32 to vector<2x256xf32>
    %620 = arith.mulf %619, %618 : vector<2x256xf32>
    %621 = arith.addf %616, %620 : vector<2x256xf32>
    %c0_277 = arith.constant 0 : index
    %c0_278 = arith.constant 0 : index
    %c147 = arith.constant 147 : index
    %622 = vector.load %arg5[%c0_277, %c0_278, %c147] : memref<2x2x512xf32, #tpu.memory_space<vmem>>, vector<1x2x256xf32>
    %623 = vector.shape_cast %622 : vector<1x2x256xf32> to vector<2x256xf32>
    %624 = vector.broadcast %34 : f32 to vector<2x256xf32>
    %625 = arith.mulf %624, %623 : vector<2x256xf32>
    %626 = arith.addf %621, %625 : vector<2x256xf32>
    %c1_279 = arith.constant 1 : index
    %c0_280 = arith.constant 0 : index
    %c147_281 = arith.constant 147 : index
    %627 = vector.load %arg5[%c1_279, %c0_280, %c147_281] : memref<2x2x512xf32, #tpu.memory_space<vmem>>, vector<1x2x256xf32>
    %628 = vector.shape_cast %627 : vector<1x2x256xf32> to vector<2x256xf32>
    %629 = vector.broadcast %83 : f32 to vector<2x256xf32>
    %630 = arith.mulf %629, %628 : vector<2x256xf32>
    %631 = arith.addf %626, %630 : vector<2x256xf32>
    %c0_282 = arith.constant 0 : index
    %c0_283 = arith.constant 0 : index
    %c163 = arith.constant 163 : index
    %632 = vector.load %arg5[%c0_282, %c0_283, %c163] : memref<2x2x512xf32, #tpu.memory_space<vmem>>, vector<1x2x256xf32>
    %633 = vector.shape_cast %632 : vector<1x2x256xf32> to vector<2x256xf32>
    %634 = vector.broadcast %41 : f32 to vector<2x256xf32>
    %635 = arith.mulf %634, %633 : vector<2x256xf32>
    %636 = arith.addf %631, %635 : vector<2x256xf32>
    %c1_284 = arith.constant 1 : index
    %c0_285 = arith.constant 0 : index
    %c163_286 = arith.constant 163 : index
    %637 = vector.load %arg5[%c1_284, %c0_285, %c163_286] : memref<2x2x512xf32, #tpu.memory_space<vmem>>, vector<1x2x256xf32>
    %638 = vector.shape_cast %637 : vector<1x2x256xf32> to vector<2x256xf32>
    %639 = vector.broadcast %90 : f32 to vector<2x256xf32>
    %640 = arith.mulf %639, %638 : vector<2x256xf32>
    %641 = arith.addf %636, %640 : vector<2x256xf32>
    %c0_287 = arith.constant 0 : index
    %c0_288 = arith.constant 0 : index
    %c179 = arith.constant 179 : index
    %642 = vector.load %arg5[%c0_287, %c0_288, %c179] : memref<2x2x512xf32, #tpu.memory_space<vmem>>, vector<1x2x256xf32>
    %643 = vector.shape_cast %642 : vector<1x2x256xf32> to vector<2x256xf32>
    %644 = vector.broadcast %48 : f32 to vector<2x256xf32>
    %645 = arith.mulf %644, %643 : vector<2x256xf32>
    %646 = arith.addf %641, %645 : vector<2x256xf32>
    %c1_289 = arith.constant 1 : index
    %c0_290 = arith.constant 0 : index
    %c179_291 = arith.constant 179 : index
    %647 = vector.load %arg5[%c1_289, %c0_290, %c179_291] : memref<2x2x512xf32, #tpu.memory_space<vmem>>, vector<1x2x256xf32>
    %648 = vector.shape_cast %647 : vector<1x2x256xf32> to vector<2x256xf32>
    %649 = vector.broadcast %97 : f32 to vector<2x256xf32>
    %650 = arith.mulf %649, %648 : vector<2x256xf32>
    %651 = arith.addf %646, %650 : vector<2x256xf32>
    %c13_i32 = arith.constant 13 : i32
    %652 = vector.broadcast %c13_i32 : i32 to vector<1x256xi32>
    %653 = arith.cmpi slt, %117, %652 : vector<1x256xi32>
    %cst_292 = arith.constant 0.000000e+00 : f32
    %654 = vector.shape_cast %653 : vector<1x256xi1> to vector<1x256xi1>
    %655 = vector.broadcast %654 : vector<1x256xi1> to vector<2x256xi1>
    %656 = vector.broadcast %cst_292 : f32 to vector<2x256xf32>
    %657 = arith.select %655, %651, %656 : vector<2x256xi1>, vector<2x256xf32>
    %658 = arith.addf %580, %657 : vector<2x256xf32>
    %659 = arith.negf %658 : vector<2x256xf32>
    %660 = math.exp %659 : vector<2x256xf32>
    %cst_293 = arith.constant 1.000000e+00 : f32
    %661 = vector.broadcast %cst_293 : f32 to vector<2x256xf32>
    %662 = arith.addf %661, %660 : vector<2x256xf32>
    %663 = arith.divf %661, %662 : vector<2x256xf32>
    %c0_294 = arith.constant 0 : index
    %c0_295 = arith.constant 0 : index
    %c0_296 = arith.constant 0 : index
    %664 = vector.load %arg3[%c0_294, %c0_295, %c0_296] : memref<2x4x256xf32, #tpu.memory_space<vmem>>, vector<2x4x256xf32>
    %665 = vector.shape_cast %663 : vector<2x256xf32> to vector<2x1x256xf32>
    %666 = vector.broadcast %665 : vector<2x1x256xf32> to vector<2x4x256xf32>
    %667 = arith.mulf %664, %666 : vector<2x4x256xf32>
    %c0_297 = arith.constant 0 : index
    %c0_298 = arith.constant 0 : index
    %c0_299 = arith.constant 0 : index
    %668 = vector.load %arg4[%c0_297, %c0_298, %c0_299] : memref<2x4x256xf32, #tpu.memory_space<vmem>>, vector<2x4x256xf32>
    tpu.vector_store %arg4[%c0_297, %c0_298, %c0_299], %667 {strides = array<i32>} : memref<2x4x256xf32, #tpu.memory_space<vmem>>, vector<2x4x256xf32>,
    return
  }
  func.func @transform_0(%arg0: i32) -> i32 {
    %c0_i32 = arith.constant 0 : i32
    %c0_i32_0 = arith.constant 0 : i32
    return %c0_i32 : i32
  }
  func.func @transform_1(%arg0: i32) -> (i32, i32) {
    %c0_i32 = arith.constant 0 : i32
    %c0_i32_0 = arith.constant 0 : i32
    %c0_i32_1 = arith.constant 0 : i32
    return %c0_i32, %c0_i32_0 : i32, i32
  }
  func.func @transform_2(%arg0: i32) -> (i32, i32, i32) {
    %c0_i32 = arith.constant 0 : i32
    %c0_i32_0 = arith.constant 0 : i32
    %c0_i32_1 = arith.constant 0 : i32
    return %arg0, %c0_i32, %c0_i32_0 : i32, i32, i32
  }
  func.func @transform_3(%arg0: i32) -> (i32, i32, i32) {
    %c0_i32 = arith.constant 0 : i32
    %c0_i32_0 = arith.constant 0 : i32
    %c0_i32_1 = arith.constant 0 : i32
    return %arg0, %c0_i32, %c0_i32_0 : i32, i32, i32
  }
}

</mosaic_0001>

<bundles_post_ra>
// kernel: tpu_custom_call.1
= control target key start
LH: loop header
LB: loop body
LE: loop exit
PB: predicated region body
PF: predicated region fallthrough
CT: control target
= control target key end

     0   :  { %8 = vsyncpa [#allocation6], 0  ;;  %s2469_s0 = inlined_call_operand.hbm [shape: f32[98], index: 0, kind: input, shape index: {}]   ;;  %s2470_s1 = inlined_call_operand.vmem [shape: s32[1,256], index: 1, kind: input, shape index: {}]   ;;  %s2471_s2 = inlined_call_operand.hbm [shape: f32[2,4,256], index: 2, kind: input, shape index: {}]   ;;  %s2472_s3 = inlined_call_operand.hbm [shape: f32[2,4,256], index: 3, kind: output, shape index: {}]  }
   0x1   :  { %9 = vsyncpa [#allocation4], 0 }
   0x2   :  { %10 = vsyncpa [#allocation5], 0  ;;  %s1595_s14 = scalar_lea.hbm %s2469_s0, 16 }
   0x3   :  { %p1596_p0 = scmp.ne.s32.totalorder %s2469_s0, %s1595_s14  ;;  %p1599_p1 = scmp.lt.u32.totalorder %s1595_s14, %s2469_s0 }
   0x5   :  { %p1601_p2 = pnand %p1599_p1, %p1596_p0 }
   0x7   :  { %1604 = shalt.err (!%p1601_p2)
}
   0x8   :  { %s1655_s19 = smov [#allocation3]   ;;  %s1656_s22 = smov [#allocation7]  }
   0x9   :  { %18 = dma.hbm_to_smem %s2469_s0, 16, %s1655_s19, [#allocation6]  }
   0xa   :  { %s26_s23 = sshll.u32 %s1656_s22, 4  ;;  %s1605_s26 = scalar_lea.hbm %s2471_s2, 256  ;;  %s27_s23 = int_to_ptr.vmem [resolvable:$true] %s26_s23 }
   0xb   :  { %p1606_p3 = scmp.ne.s32.totalorder %s2471_s2, %s1605_s26  ;;  %p1609_p4 = scmp.lt.u32.totalorder %s1605_s26, %s2471_s2 }
   0xd   :  { %p1611_p5 = pnand %p1609_p4, %p1606_p3 }
   0xf   :  { %1614 = shalt.err (!%p1611_p5)
}
  0x10   :  { %s1615_s4 = scalar_lea.vmem %s27_s23, 256  ;;  %p1620_p7 = scmp.lt.s32.totalorder %s27_s23, %s27_s23 }
  0x11   :  { %p1616_p6 = scmp.ne.s32.totalorder %s27_s23, %s1615_s4  ;;  %p1621_p8 = scmp.lt.s32.totalorder %s1615_s4, %s1615_s4 }
  0x13   :  { %p1622_p9 = por %p1621_p8, %p1620_p7 }
  0x15   :  { %p1623_p10 = pnand %p1622_p9, %p1616_p6 }
  0x17   :  { %1626 = shalt.err (!%p1623_p10)
}
  0x18   :  { %s1657_s0 = smov 128   ;;  %s1658_s5 = smov 8  }
  0x19   :  { %32 = dma.hbm_to_vmem [thread:$0]  %s2471_s2, 256, %s27_s23, [#allocation4], %s1657_s0, %s1657_s0, %s1658_s5  }
  0x1a   :  { %1649 = dma.done.wait [#allocation6], 16  }
  0x1b   :  { %1650 = vsyncadd [#allocation6], 4294967280 }
  0x1c   :  { %1651 = dma.done.wait [#allocation4], 256  }
  0x1d   :  { %1652 = vsyncadd [#allocation4], 4294967040 }
  0x1e   :  { %39 = sfence }
  0x1f   :  { %v142_v0 = vld [vmem:[#allocation7] sm:$0xff]  ;;  %v143_v1 = vld [vmem:[#allocation7 + $0x8] sm:$0xff]  ;;  %vm150_vm0 = vcmask 1043456   ;;  %v1659_v2 = vmov 0.0   ;;  %v1660_v15 = vmov 1983009808   ;;  %v223_v17 = vlaneseq }
  0x20   :  { %139 = vst [vmem:[#allocation2 + $0x8] sm:$0x3] %v1659_v2  ;;  %v146_v3 = vcombine.high %v142_v0, %v142_v0  ;;  %v147_v4 = vcombine.high %v143_v1, %v143_v1  ;;  %v183_v5 = vsel %vm150_vm0, %v142_v0, -inf  ;;  %v197_v6 = vsel %vm150_vm0, %v143_v1, -inf  ;;  %138 = vst [vmem:[#allocation2] sm:$0x3] %v1659_v2 }
  0x21   :  { %140 = vst [vmem:[#allocation2 + $0x6] sm:$0x3] %v1659_v2  ;;  %141 = vst [vmem:[#allocation2 + $0xe] sm:$0x3] %v1659_v2  ;;  %v184_v7 = vrot.slane %v183_v5, 4  ;;  %v198_v8 = vrot.slane %v197_v6, 4  ;;  %v221_v16 = vunpack.c.l.s4 %v1660_v15 }
  0x22   :  { %v190_v9 = vsel %vm150_vm0, %v146_v3, -inf  ;;  %v204_v10 = vsel %vm150_vm0, %v147_v4, -inf  ;;  %v151_v22 = vsel %vm150_vm0, %v142_v0, 0.0  ;;  %v1728_v28 = vshrl.u32 %v223_v17, 7  ;;  %s1527_s2 = sld [smem:[#allocation3 + $0x3f]]  ;;  %s1520_s8 = sld [smem:[#allocation3 + $0x38]] }
  0x23   :  { %v185_v11 = vmax.f32 %v183_v5, %v184_v7  ;;  %v191_v12 = vrot.slane %v190_v9, 4  ;;  %v199_v13 = vmax.f32 %v197_v6, %v198_v8  ;;  %v205_v14 = vrot.slane %v204_v10, 4  ;;  %s1521_s9 = sld [smem:[#allocation3 + $0x39]]  ;;  %s1522_s10 = sld [smem:[#allocation3 + $0x3a]] }
  0x24   :  { %v222_v27 = vunpack.c.0.s8 %v221_v16  ;;  %v152_v29 = vrot.slane %v151_v22, 4  ;;  %v158_v30 = vsel %vm150_vm0, %v146_v3, 0.0  ;;  %v165_v36 = vsel %vm150_vm0, %v143_v1, 0.0  ;;  %s1742_s11 = sld [smem:[#allocation3 + $0x3b]]  ;;  %s1744_s12 = sld [smem:[#allocation3 + $0x40]] }
  0x25   :  { %v186_v18 = vrot.slane %v185_v11, 2  ;;  %v192_v19 = vmax.f32 %v190_v9, %v191_v12  ;;  %v200_v20 = vrot.slane %v199_v13, 2  ;;  %v206_v21 = vmax.f32 %v204_v10, %v205_v14  ;;  %s1747_s13 = sld [smem:[#allocation3 + $0x3c]]  ;;  %s1529_s14 = sld [smem:[#allocation3 + $0x41]] }
  0x26   :  { %v153_v35 = vadd.f32 %v152_v29, %v151_v22  ;;  %v1733_v41 = vsub.s32 %v222_v27, %v1728_v28  ;;  %v159_v43 = vrot.slane %v158_v30, 4  ;;  %v166_v46 = vrot.slane %v165_v36, 4  ;;  %s1661_s15 = smov 96   ;;  %s1662_s16 = smov 112  }
  0x27   :  { %v187_v23 = vmax.f32 %v185_v11, %v186_v18  ;;  %v193_v24 = vrot.slane %v192_v19, 2  ;;  %v201_v25 = vmax.f32 %v199_v13, %v200_v20  ;;  %v207_v26 = vrot.slane %v206_v21, 2  ;;  %s1478_s17 = sld [smem:[#allocation3 + $0xe]]  ;;  %s1471_s18 = sld [smem:[#allocation3 + $0x7]] }
  0x28   :  { %v154_v42 = vrot.slane %v153_v35, 2  ;;  %v172_v47 = vsel %vm150_vm0, %v147_v4, 0.0  ;;  %v160_v49 = vadd.f32 %v159_v43, %v158_v30  ;;  %v167_v53 = vadd.f32 %v166_v46, %v165_v36  ;;  %s1479_s19 = sld [smem:[#allocation3 + $0xf]]  ;;  %s1472_s20 = sld [smem:[#allocation3 + $0x8]] }
  0x29   :  { %v188_v31 = vrot.slane %v187_v23, 1  ;;  %v194_v32 = vmax.f32 %v192_v19, %v193_v24  ;;  %v202_v33 = vrot.slane %v201_v25, 1  ;;  %v208_v34 = vmax.f32 %v206_v21, %v207_v26  ;;  %s1773_s21 = sld [smem:[#allocation3 + $0xa]]  ;;  %s1775_s22 = sld [smem:[#allocation3 + $0x9]] }
  0x2a   :  { %v155_v48 = vadd.f32 %v154_v42, %v153_v35  ;;  %v173_v50 = vrot.slane %v172_v47, 4  ;;  %v161_v55 = vrot.slane %v160_v49, 2  ;;  %v168_v59 = vrot.slane %v167_v53, 2  ;;  %s1777_s23 = sld [smem:[#allocation3 + $0x31]]  ;;  %s1779_s24 = sld [smem:[#allocation3]] }
  0x2b   :  { %v189_v37 = vmax.f32 %v187_v23, %v188_v31  ;;  %v195_v38 = vrot.slane %v194_v32, 1  ;;  %v203_v39 = vmax.f32 %v201_v25, %v202_v33  ;;  %v209_v40 = vrot.slane %v208_v34, 1  ;;  %s1787_s25 = sld [smem:[#allocation3 + $0x10]]  ;;  %s1789_s26 = sld [smem:[#allocation3 + $0xb]] }
  0x2c   :  { %v156_v54 = vrot.slane %v155_v48, 1  ;;  %v174_v56 = vadd.f32 %v173_v50, %v172_v47  ;;  %vm240_vm1 = vcmask 1041409   ;;  %v162_v60 = vadd.f32 %v161_v55, %v160_v49  ;;  %s1791_s27 = sld [smem:[#allocation3 + $0x32]]  ;;  %s1793_s28 = sld [smem:[#allocation3 + $0x1]] }
  0x2d   :  { %v196_v44 = vmax.f32 %v194_v32, %v195_v38  ;;  %v210_v45 = vmax.f32 %v208_v34, %v209_v40  ;;  %vm242_vm2 = vcmask 1043459   ;;  %v169_v0 = vadd.f32 %v168_v59, %v167_v53  ;;  %s1799_s29 = sld [smem:[#allocation3 + $0x16]]  ;;  %s1801_s30 = sld [smem:[#allocation3 + $0x15]] }
  0x2e   :  { %v175_v61 = vrot.slane %v174_v56, 2  ;;  %v157_v63 = vadd.f32 %v156_v54, %v155_v48  ;;  %vm244_vm3 = vcmask 1045509   ;;  %v163_v1 = vrot.slane %v162_v60, 1  ;;  %s1805_s4 = sld [smem:[#allocation3 + $0x34]]  ;;  %s1807_s6 = sld [smem:[#allocation3 + $0x3]] }
  0x2f   :  { %v254_v51 = vcombine.low %v189_v37, %v196_v44  ;;  %v262_v52 = vcombine.low %v203_v39, %v210_v45  ;;  %vm246_vm4 = vcmask 1047559   ;;  %v170_v4 = vrot.slane %v169_v0, 1  ;;  %s1811_s7 = sld [smem:[#allocation3 + $0x33]] }
  0x30   :  { %v176_v2 = vadd.f32 %v175_v61, %v174_v56  ;;  %v164_v6 = vadd.f32 %v163_v1, %v162_v60  ;;  %v211_v10 = vmul.f32 0.25, %v157_v63  ;;  %v318_v18 = vstv %s1527_s2  ;;  %s1813_s2 = sld [smem:[#allocation3 + $0x2]] }
  0x31   :  { %v261_v57 = vrot.slane %v254_v51, %v1733_v41  ;;  %v269_v58 = vrot.slane %v262_v52, %v1733_v41  ;;  %v171_v9 = vadd.f32 %v170_v4, %v169_v0  ;;  %v299_v19 = vstv %s1520_s8  ;;  %s1819_s8 = sld [smem:[#allocation3 + $0x11]] }
  0x32   :  { %v177_v7 = vrot.slane %v176_v2, 1  ;;  %v212_v13 = vmul.f32 0.25, %v164_v6  ;;  %v464_v23 = vstv %s1521_s9  ;;  %v622_v24 = vstv %s1522_s10  ;;  %s1821_s9 = sld [smem:[#allocation3 + $0x35]]  ;;  %s1825_s10 = sld [smem:[#allocation3 + $0xc]] }
  0x33   :  { %v272_v62 = vrot.slane %v269_v58, 7  ;;  %v213_v14 = vmul.f32 0.25, %v171_v9  ;;  %v780_v32 = vstv %s1742_s11  ;;  %v482_v33 = vstv %s1744_s12  ;;  %s1831_s11 = sld [smem:[#allocation3 + $0x4]]  ;;  %s1841_s12 = sld [smem:[#allocation3 + $0x47]] }
  0x34   :  { %v178_v12 = vadd.f32 %v177_v7, %v176_v2  ;;  %v219_v16 = vcombine.low %v211_v10, %v212_v13  ;;  %v925_v39 = vstv %s1747_s13  ;;  %v640_v40 = vstv %s1529_s14  ;;  %s1843_s13 = sld [smem:[#allocation3 + $0x46]] }
  0x35   :  { %v273_v3 = vsel %vm240_vm1, %v272_v62, %v261_v57  ;;  %v308_v44 = vstv %s1478_s17  ;;  %v289_v45 = vstv %s1471_s18  ;;  %v473_v49 = vstv %s1479_s19  ;;  %s1850_s14 = sld [smem:[#allocation3 + $0x36]]  ;;  %s1852_s17 = sld [smem:[#allocation3 + $0x5]] }
  0x36   :  { %v274_v5 = vsel %vm242_vm2, %v272_v62, %v273_v3  ;;  %v214_v15 = vmul.f32 0.25, %v178_v12  ;;  %v226_v21 = vrot.slane %v219_v16, %v1733_v41  ;;  %v455_v50 = vstv %s1472_s20  ;;  %s1866_s18 = sld [smem:[#allocation3 + $0x12]]  ;;  %s1868_s19 = sld [smem:[#allocation3 + $0x17]] }
  0x37   :  { %v275_v8 = vsel %vm244_vm3, %v272_v62, %v274_v5  ;;  %v771_v53 = vstv %s1773_s21  ;;  %v613_v54 = vstv %s1775_s22  ;;  %v286_v55 = vstv %s1777_s23  ;;  %s1519_s20 = sld [smem:[#allocation3 + $0x37]]  ;;  %s1470_s21 = sld [smem:[#allocation3 + $0x6]] }
  0x38   :  { %v276_v11 = vsel %vm246_vm4, %v272_v62, %v275_v8  ;;  %v227_v17 = vcombine.low %v213_v14, %v214_v15  ;;  %v282_v56 = vstv %s1779_s24  ;;  %v631_v59 = vstv %s1787_s25  ;;  %s1663_s22 = smov 80   ;;  %s1886_s23 = sld [smem:[#allocation3 + $0xd]] }
  0x39   :  { %279 = vst [vmem:[#allocation2 + $0xa] sm:$0xf] %v276_v11  ;;  %v916_v60 = vstv %s1789_s26  ;;  %v452_v63 = vstv %s1791_s27  ;;  %v449_v0 = vstv %s1793_s28  ;;  %v491_v6 = vstv %s1799_s29  ;;  %s1525_s24 = sld [smem:[#allocation3 + $0x3d]]  ;;  %s1492_s25 = sld [smem:[#allocation3 + $0x1c]] }
  0x3a   :  { %v234_v20 = vrot.slane %v227_v17, %v1733_v41  ;;  %v327_v7 = vstv %s1801_s30  ;;  %v768_v9 = vstv %s1805_s4  ;;  %v765_v11 = vstv %s1807_s6  ;;  %s1530_s26 = sld [smem:[#allocation3 + $0x42]]  ;;  %s1536_s27 = sld [smem:[#allocation3 + $0x48]] }
  0x3b   :  { %v610_v12 = vstv %s1811_s7  ;;  %v607_v13 = vstv %s1813_s2  ;;  %s1493_s28 = sld [smem:[#allocation3 + $0x1d]]  ;;  %s1483_s29 = sld [smem:[#allocation3 + $0x13]]  ;;  %vm295_vm5 = vcmask 916480   ;;  %vm314_vm6 = vcmask 785408  }
  0x3c   :  { %v239_v25 = vrot.slane %v234_v20, 7  ;;  %v913_v20 = vstv %s1821_s9  ;;  %s1531_s30 = sld [smem:[#allocation3 + $0x43]]  ;;  %s1488_s4 = sld [smem:[#allocation3 + $0x18]]  ;;  %vm333_vm7 = vcmask 654336   ;;  %vm353_vm8 = vcmask 523264  }
  0x3d   :  { %s1526_s6 = sld [smem:[#allocation3 + $0x3e]]  ;;  %s1664_s7 = smov 64   ;;  %vm373_vm9 = vcmask 392192   ;;  %vm392_vm10 = vcmask 261120   ;;  %vm440_vm14 = vcmask 416768  }
  0x3e   :  { %v241_v31 = vsel %vm240_vm1, %v239_v25, %v226_v21  ;;  %v1074_v21 = vstv %s1825_s10  ;;  %s1542_s2 = sld [smem:[#allocation3 + $0x4e]]  ;;  %s1489_s9 = sld [smem:[#allocation3 + $0x19]] }
  0x3f   :  { %v243_v34 = vsel %vm242_vm2, %v239_v25, %v241_v31  ;;  %v500_v31 = vstv %s1841_s12  ;;  %s1494_s10 = sld [smem:[#allocation3 + $0x1e]]  ;;  %s1532_s12 = sld [smem:[#allocation3 + $0x44]]  ;;  %vm598_vm2 = vcmask 408576  }
  0x40   :  { %v1750_v22 = vld [vmem:[#allocation2 + $0x8] sm:$0x3f]  ;;  %v245_v35 = vsel %vm244_vm3, %v239_v25, %v243_v34 }
  0x41   :  { %v319_v26 = vmul.f32 %v318_v18, %v1750_v22  ;;  %v300_v27 = vmul.f32 %v299_v19, %v1750_v22  ;;  %v465_v29 = vmul.f32 %v464_v23, %v1750_v22  ;;  %v623_v30 = vmul.f32 %v622_v24, %v1750_v22 }
  0x42   :  { %v247_v36 = vsel %vm246_vm4, %v239_v25, %v245_v35  ;;  %v781_v37 = vmul.f32 %v780_v32, %v1750_v22  ;;  %v483_v38 = vmul.f32 %v482_v33, %v1750_v22  ;;  %v926_v42 = vmul.f32 %v925_v39, %v1750_v22 }
  0x43   :  { %321 = vrot.lane.b32.xlu1 %v319_v26, %s1661_s15  ;;  %302 = vrot.lane.b32.xlu0 %v300_v27, %s1662_s16  ;;  %249 = vst [vmem:[#allocation2 + $0x2] sm:$0xf] %v247_v36  ;;  %v641_v43 = vmul.f32 %v640_v40, %v1750_v22  ;;  %v287_v61 = vmul.f32 %v286_v55, %v1750_v22  ;;  %v789_v19 = vstv %s1819_s8  ;;  %v910_v26 = vstv %s1831_s11  ;;  %s1541_s8 = sld [smem:[#allocation3 + $0x4d]]  ;;  %s1484_s11 = sld [smem:[#allocation3 + $0x14]] }
  0x44   :  { %v453_v2 = vmul.f32 %v452_v63, %v1750_v22  ;;  %v769_v10 = vmul.f32 %v768_v9, %v1750_v22  ;;  %v611_v15 = vmul.f32 %v610_v12, %v1750_v22  ;;  %v914_v25 = vmul.f32 %v913_v20, %v1750_v22  ;;  %v1931_v12 = vld [vmem:[#allocation2 + $0xa] sm:$0x3f] }
  0x45   :  { %v1071_v32 = vstv %s1850_s14  ;;  %v337_v33 = vstv %s1843_s13  ;;  %v1068_v36 = vstv %s1852_s17  ;;  %v1241_v9 = vstv %s1526_s6  ;;  %s1499_s13 = sld [smem:[#allocation3 + $0x23]]  ;;  %s1537_s14 = sld [smem:[#allocation3 + $0x49]] }
  0x46   :  { %v1072_v35 = vmul.f32 %v1071_v32, %v1750_v22  ;;  %v338_v39 = vmul.f32 %v337_v33, %v1750_v22  ;;  %s1543_s17 = sld [smem:[#allocation3 + $0x4f]]  ;;  %s1550_s6 = sld [smem:[#allocation3 + $0x56]]  ;;  %vm756_vm4 = vcmask 400384  }
  0x47   :  { %467 = vrot.lane.b32.xlu1 %v465_v29, %s1662_s16  ;;  %625 = vrot.lane.b32.xlu0 %v623_v30, %s1662_s16 }
  0x4a   :  { %v1781_v46 = vld [vmem:[#allocation2] sm:$0x3f] }
  0x4b   :  { %783 = vrot.lane.b32.xlu1 %v781_v37, %s1662_s16  ;;  %485 = vrot.lane.b32.xlu0 %v483_v38, %s1661_s15  ;;  %v309_v47 = vmul.f32 %v308_v44, %v1781_v46  ;;  %v290_v48 = vmul.f32 %v289_v45, %v1781_v46  ;;  %v474_v51 = vmul.f32 %v473_v49, %v1781_v46  ;;  %v1229_v44 = vstv %s1519_s20  ;;  %s1495_s20 = sld [smem:[#allocation3 + $0x1f]] }
  0x4c   :  { %v456_v52 = vmul.f32 %v455_v50, %v1781_v46  ;;  %v772_v57 = vmul.f32 %v771_v53, %v1781_v46  ;;  %v614_v58 = vmul.f32 %v613_v54, %v1781_v46  ;;  %v283_v62 = vmul.f32 %v282_v56, %v1781_v46  ;;  %v1914_v56 = vld [vmem:[#allocation2 + $0x2] sm:$0x3f] }
  0x4d   :  { %v450_v3 = vmul.f32 %v449_v0, %v1781_v46  ;;  %v632_v4 = vmul.f32 %v631_v59, %v1781_v46  ;;  %v917_v5 = vmul.f32 %v916_v60, %v1781_v46  ;;  %v766_v14 = vmul.f32 %v765_v11, %v1781_v46 }
  0x4e   :  { %v1833_v1 = vadd.f32 %v287_v61, %v283_v62  ;;  %v608_v16 = vmul.f32 %v607_v13, %v1781_v46  ;;  %v492_v17 = vmul.f32 %v491_v6, %v1781_v46  ;;  %v328_v18 = vmul.f32 %v327_v7, %v1781_v46  ;;  %v807_v6 = vld [vmem:[#allocation2 + $0x2] sm:$0xf] }
  0x4f   :  { %928 = vrot.lane.b32.xlu1 %v926_v42, %s1662_s16  ;;  %643 = vrot.lane.b32.xlu0 %v641_v43, %s1661_s15  ;;  %v1847_v8 = vadd.f32 %v453_v2, %v450_v3  ;;  %v1872_v23 = vadd.f32 %v769_v10, %v766_v14  ;;  %v911_v27 = vmul.f32 %v910_v26, %v1781_v46  ;;  %v934_v42 = vstv %s1866_s18  ;;  %s1490_s18 = sld [smem:[#allocation3 + $0x1a]] }
  0x50   :  { %v1874_v24 = vadd.f32 %v611_v15, %v608_v16  ;;  %v790_v29 = vmul.f32 %v789_v19, %v1781_v46  ;;  %v1075_v30 = vmul.f32 %v1074_v21, %v1781_v46  ;;  %v1069_v37 = vmul.f32 %v1068_v36, %v1781_v46 }
  0x51   :  { %v1888_v34 = vadd.f32 %v914_v25, %v911_v27  ;;  %v501_v38 = vmul.f32 %v500_v31, %v1750_v22  ;;  %v649_v43 = vstv %s1868_s19  ;;  %v1226_v45 = vstv %s1470_s21  ;;  %s1538_s19 = sld [smem:[#allocation3 + $0x4a]]  ;;  %s1533_s21 = sld [smem:[#allocation3 + $0x45]] }
  0x52   :  { %v1897_v40 = vadd.f32 %v1072_v35, %v1069_v37  ;;  %v935_v49 = vmul.f32 %v934_v42, %v1781_v46  ;;  %v650_v50 = vmul.f32 %v649_v43, %v1781_v46  ;;  %v1083_v53 = vstv %s1525_s24  ;;  %s1549_s24 = sld [smem:[#allocation3 + $0x55]] }
  0x53   :  { %311 = vrot.lane.b32.xlu1 %v309_v47, %s1661_s15  ;;  %292 = vrot.lane.b32.xlu0 %v290_v48, %s1662_s16  ;;  %v1230_v47 = vmul.f32 %v1229_v44, %v1750_v22  ;;  %v1227_v48 = vmul.f32 %v1226_v45, %v1781_v46  ;;  %v1084_v55 = vmul.f32 %v1083_v53, %v1750_v22  ;;  %v658_v61 = vstv %s1536_s27  ;;  %s1501_s27 = sld [smem:[#allocation3 + $0x25]] }
  0x54   :  { %v509_v62 = vstv %s1493_s28  ;;  %v659_v63 = vmul.f32 %v658_v61, %v1750_v22  ;;  %v1092_v2 = vstv %s1483_s29  ;;  %v943_v3 = vstv %s1531_s30  ;;  %s1491_s28 = sld [smem:[#allocation3 + $0x1b]]  ;;  %s1506_s30 = sld [smem:[#allocation3 + $0x2a]] }
  0x55   :  { %v510_v0 = vmul.f32 %v509_v62, %v1914_v56  ;;  %v808_v7 = vstv %s1488_s4  ;;  %v1242_v11 = vmul.f32 %v1241_v9, %v1750_v22  ;;  %v518_v13 = vstv %s1542_s2  ;;  %s1539_s29 = sld [smem:[#allocation3 + $0x4b]]  ;;  %s1544_s4 = sld [smem:[#allocation3 + $0x50]] }
  0x56   :  { %v809_v10 = vmul.f32 %v808_v7, %v807_v6  ;;  %v358_v14 = vstv %s1541_s8  ;;  %v519_v15 = vmul.f32 %v518_v13, %v1931_v12  ;;  %v1250_v21 = vstv %s1484_s11  ;;  %s1497_s2 = sld [smem:[#allocation3 + $0x21]]  ;;  %s1666_s11 = smov 32  }
  0x57   :  { %476 = vrot.lane.b32.xlu1 %v474_v51, %s1661_s15  ;;  %458 = vrot.lane.b32.xlu0 %v456_v52, %s1662_s16  ;;  %v1907_v51 = vadd.f32 %v1230_v47, %v1227_v48  ;;  %v1232_v52 = vstv %s1886_s23  ;;  %v359_v16 = vmul.f32 %v358_v14, %v1931_v12  ;;  %v1101_v25 = vstv %s1532_s12  ;;  %s1665_s23 = smov 48   ;;  %s1545_s8 = sld [smem:[#allocation3 + $0x51]] }
  0x58   :  { %v1233_v54 = vmul.f32 %v1232_v52, %v1781_v46  ;;  %v1251_v26 = vmul.f32 %v1250_v21, %v1781_v46  ;;  %v1102_v27 = vmul.f32 %v1101_v25, %v1750_v22  ;;  %v818_v31 = vstv %s1537_s14  ;;  %s1556_s12 = sld [smem:[#allocation3 + $0x5c]]  ;;  %s1503_s14 = sld [smem:[#allocation3 + $0x27]] }
  0x59   :  { %v676_v35 = vstv %s1543_s17  ;;  %v827_v44 = vstv %s1495_s20  ;;  %v1259_v45 = vstv %s1533_s21  ;;  %s1508_s17 = sld [smem:[#allocation3 + $0x2c]]  ;;  %s2000_s20 = sld [smem:[#allocation3 + $0x57]] }
  0x5a   :  { %v828_v47 = vmul.f32 %v827_v44, %v1914_v56  ;;  %v1260_v48 = vmul.f32 %v1259_v45, %v1750_v22  ;;  %v386_v62 = vstv %s1506_s30  ;;  %s2012_s21 = sld [smem:[#allocation3 + $0x58]]  ;;  %s2070_s30 = sld [smem:[#allocation3 + $0x2f]] }
  0x5b   :  { %774 = vrot.lane.b32.xlu1 %v772_v57, %s1662_s16  ;;  %616 = vrot.lane.b32.xlu0 %v614_v58, %s1662_s16  ;;  %v347_v57 = vstv %s1492_s25  ;;  %v798_v58 = vstv %s1530_s26  ;;  %s1548_s25 = sld [smem:[#allocation3 + $0x54]]  ;;  %s1496_s26 = sld [smem:[#allocation3 + $0x20]] }
  0x5c   :  { %v348_v59 = vmul.f32 %v347_v57, %v1914_v56  ;;  %v799_v60 = vmul.f32 %v798_v58, %v1750_v22  ;;  %v1268_v58 = vstv %s1491_s28  ;;  %v1128_v7 = vstv %s1497_s2  ;;  %s2036_s28 = sld [smem:[#allocation3 + $0x5e]]  ;;  %s2108_s2 = sld [smem:[#allocation3 + $0x61]] }
  0x5d   :  { %v979_v9 = vstv %s1545_s8  ;;  %s1667_s8 = smov 50  }
  0x5f   :  { %634 = vrot.lane.b32.xlu1 %v632_v4, %s1661_s15  ;;  %919 = vrot.lane.b32.xlu0 %v917_v5, %s1662_s16  ;;  %v1093_v4 = vmul.f32 %v1092_v2, %v1781_v46  ;;  %v944_v5 = vmul.f32 %v943_v3, %v1750_v22  ;;  %v677_v46 = vmul.f32 %v676_v35, %v1931_v12  ;;  %v694_v3 = vstv %s1550_s6  ;;  %s2088_s6 = sld [smem:[#allocation3 + $0x60]] }
  0x60   :  { %v854_v44 = vstv %s2000_s20 }
  0x63   :  { %494 = vrot.lane.b32.xlu1 %v492_v17, %s1663_s22  ;;  %330 = vrot.lane.b32.xlu0 %v328_v18, %s1663_s22  ;;  %v952_v17 = vstv %s1489_s9  ;;  %v667_v18 = vstv %s1494_s10  ;;  %s1502_s9 = sld [smem:[#allocation3 + $0x26]]  ;;  %s1540_s10 = sld [smem:[#allocation3 + $0x4c]] }
  0x64   :  { %v953_v19 = vmul.f32 %v952_v17, %v1914_v56  ;;  %v668_v20 = vmul.f32 %v667_v18, %v1914_v56 }
  0x67   :  { %792 = vrot.lane.b32.xlu1 %v790_v29, %s1661_s15  ;;  %1077 = vrot.lane.b32.xlu0 %v1075_v30, %s1662_s16  ;;  %v367_v29 = vstv %s1499_s13  ;;  %v817_v30 = vld [vmem:[#allocation2 + $0xa] sm:$0xf]  ;;  %s1555_s13 = sld [smem:[#allocation3 + $0x5b]] }
  0x68   :  { %v368_v32 = vmul.f32 %v367_v29, %v1914_v56  ;;  %v819_v33 = vmul.f32 %v818_v31, %v817_v30  ;;  %v988_v29 = vstv %s1503_s14  ;;  %v703_v30 = vstv %s1508_s17 }
  0x69   :  { %v845_v13 = vstv %s1502_s9  ;;  %v1277_v14 = vstv %s1540_s10  ;;  %v704_v35 = vmul.f32 %v703_v30, %v1914_v56  ;;  %s1668_s9 = smov 51   ;;  %s1669_s10 = smov 49  }
  0x6a   :  { %v846_v17 = vmul.f32 %v845_v13, %v1914_v56  ;;  %v1278_v18 = vmul.f32 %v1277_v14, %v1931_v12 }
  0x6b   :  { %503 = vrot.lane.b32.xlu1 %v501_v38, %s1663_s22  ;;  %340 = vrot.lane.b32.xlu0 %v338_v39, %s1663_s22  ;;  %v1110_v38 = vstv %s1490_s18  ;;  %v961_v39 = vstv %s1538_s19  ;;  %s1546_s18 = sld [smem:[#allocation3 + $0x52]]  ;;  %s1998_s19 = sld [smem:[#allocation3 + $0x5d]] }
  0x6c   :  { %v1111_v42 = vmul.f32 %v1110_v38, %v1914_v56  ;;  %v962_v43 = vmul.f32 %v961_v39, %v1931_v12 }
  0x6f   :  { %937 = vrot.lane.b32.xlu1 %v935_v49, %s1661_s15  ;;  %652 = vrot.lane.b32.xlu0 %v650_v50, %s1663_s22  ;;  %v536_v49 = vstv %s1549_s24  ;;  %v377_v50 = vstv %s1548_s25  ;;  %s2018_s24 = sld [smem:[#allocation3 + $0x2d]]  ;;  %s2024_s25 = sld [smem:[#allocation3 + $0x53]] }
  0x70   :  { %v537_v52 = vmul.f32 %v536_v49, %v1931_v12  ;;  %v378_v53 = vmul.f32 %v377_v50, %v1931_v12 }
  0x73   :  { %1235 = vrot.lane.b32.xlu1 %v1233_v54, %s1662_s16  ;;  %1086 = vrot.lane.b32.xlu0 %v1084_v55, %s1662_s16  ;;  %v970_v54 = vstv %s1496_s26  ;;  %v685_v55 = vstv %s1501_s27  ;;  %s2028_s26 = sld [smem:[#allocation3 + $0x59]]  ;;  %s2030_s27 = sld [smem:[#allocation3 + $0x2e]] }
  0x74   :  { %v971_v22 = vmul.f32 %v970_v54, %v1914_v56  ;;  %v686_v57 = vmul.f32 %v685_v55, %v1914_v56 }
  0x77   :  { %350 = vrot.lane.b32.xlu1 %v348_v59, %s1664_s7  ;;  %801 = vrot.lane.b32.xlu0 %v799_v60, %s1661_s15  ;;  %v1119_v59 = vstv %s1539_s29  ;;  %v1269_v60 = vmul.f32 %v1268_v58, %v1914_v56  ;;  %s2038_s29 = sld [smem:[#allocation3 + $0x29]] }
  0x78   :  { %v1120_v61 = vmul.f32 %v1119_v59, %v1931_v12 }
  0x7b   :  { %661 = vrot.lane.b32.xlu1 %v659_v63, %s1663_s22  ;;  %512 = vrot.lane.b32.xlu0 %v510_v0, %s1664_s7  ;;  %v836_v63 = vstv %s1544_s4  ;;  %v387_v0 = vmul.f32 %v386_v62, %v1914_v56  ;;  %s2072_s4 = sld [smem:[#allocation3 + $0x5f]] }
  0x7c   :  { %v837_v2 = vmul.f32 %v836_v63, %v1931_v12  ;;  %v863_v63 = vstv %s2018_s24 }
  0x7d   :  { %v864_v14 = vmul.f32 %v863_v63, %v1914_v56 }
  0x7f   :  { %1095 = vrot.lane.b32.xlu1 %v1093_v4, %s1661_s15  ;;  %946 = vrot.lane.b32.xlu0 %v944_v5, %s1661_s15  ;;  %v695_v5 = vmul.f32 %v694_v3, %v1931_v12 }
  0x83   :  { %811 = vrot.lane.b32.xlu1 %v809_v10, %s1663_s22  ;;  %1244 = vrot.lane.b32.xlu0 %v1242_v11, %s1662_s16  ;;  %s1500_s16 = sld [smem:[#allocation3 + $0x24]]  ;;  %v1129_v10 = vmul.f32 %v1128_v7, %v1914_v56  ;;  %v980_v11 = vmul.f32 %v979_v9, %v1931_v12  ;;  %v1155_v7 = vstv %s2028_s26 }
  0x87   :  { %521 = vrot.lane.b32.xlu1 %v519_v15, %s1664_s7  ;;  %361 = vrot.lane.b32.xlu0 %v359_v16, %s1664_s7 }
  0x89   :  { %v527_v36 = vstv %s1500_s16  ;;  %s1498_s16 = sld [smem:[#allocation3 + $0x22]] }
  0x8a   :  { %v528_v37 = vmul.f32 %v527_v36, %v1914_v56 }
  0x8b   :  { %955 = vrot.lane.b32.xlu1 %v953_v19, %s1663_s22  ;;  %670 = vrot.lane.b32.xlu0 %v668_v20, %s1664_s7  ;;  %v554_v19 = vstv %s1556_s12  ;;  %v396_v20 = vstv %s1555_s13  ;;  %s1671_s12 = smov 46   ;;  %s1672_s13 = smov 45  }
  0x8f   :  { %1253 = vrot.lane.b32.xlu1 %v1251_v26, %s1661_s15  ;;  %1104 = vrot.lane.b32.xlu0 %v1102_v27, %s1661_s15  ;;  %v555_v26 = vmul.f32 %v554_v19, %v1931_v12  ;;  %v397_v27 = vmul.f32 %v396_v20, %v1931_v12  ;;  %v1286_v36 = vstv %s1498_s16  ;;  %v1006_v20 = vstv %s2030_s27 }
  0x90   :  { %v1287_v39 = vmul.f32 %v1286_v36, %v1914_v56 }
  0x93   :  { %370 = vrot.lane.b32.xlu1 %v368_v32, %s1665_s23  ;;  %821 = vrot.lane.b32.xlu0 %v819_v33, %s1663_s22  ;;  %v989_v33 = vmul.f32 %v988_v29, %v1914_v56  ;;  %v872_v29 = vstv %s2036_s28 }
  0x97   :  { %679 = vrot.lane.b32.xlu1 %v677_v46, %s1664_s7  ;;  %530 = vrot.lane.b32.xlu0 %v528_v37, %s1665_s23  ;;  %v1137_v46 = vstv %s1546_s18 }
  0x9b   :  { %1113 = vrot.lane.b32.xlu1 %v1111_v42, %s1663_s22  ;;  %964 = vrot.lane.b32.xlu0 %v962_v43, %s1663_s22  ;;  %v1138_v42 = vmul.f32 %v1137_v46, %v1931_v12  ;;  %v712_v43 = vstv %s1998_s19 }
  0x9c   :  { %v713_v50 = vmul.f32 %v712_v43, %v1931_v12 }
  0x9f   :  { %830 = vrot.lane.b32.xlu1 %v828_v47, %s1664_s7  ;;  %1262 = vrot.lane.b32.xlu0 %v1260_v48, %s1661_s15  ;;  %s1507_s15 = sld [smem:[#allocation3 + $0x2b]] }
  0xa3   :  { %539 = vrot.lane.b32.xlu1 %v537_v52, %s1665_s23  ;;  %380 = vrot.lane.b32.xlu0 %v378_v53, %s1665_s23  ;;  %v855_v52 = vmul.f32 %v854_v44, %v1931_v12 }
  0xa5   :  { %v545_v4 = vstv %s1507_s15  ;;  %s2090_s15 = sld [smem:[#allocation3 + $0x5a]] }
  0xa6   :  { %v546_v6 = vmul.f32 %v545_v4, %v1914_v56 }
  0xa7   :  { %973 = vrot.lane.b32.xlu1 %v971_v22, %s1664_s7  ;;  %688 = vrot.lane.b32.xlu0 %v686_v57, %s1665_s23  ;;  %v997_v22 = vstv %s2012_s21 }
  0xa8   :  { %v998_v3 = vmul.f32 %v997_v22, %v1931_v12 }
  0xab   :  { %1271 = vrot.lane.b32.xlu1 %v1269_v60, %s1663_s22  ;;  %1122 = vrot.lane.b32.xlu0 %v1120_v61, %s1663_s22 }
  0xaf   :  { %389 = vrot.lane.b32.xlu1 %v387_v0, %s1666_s11  ;;  %839 = vrot.lane.b32.xlu0 %v837_v2, %s1664_s7 }
  0xb3   :  { %697 = vrot.lane.b32.xlu1 %v695_v5, %s1665_s23  ;;  %548 = vrot.lane.b32.xlu0 %v546_v6, %s1666_s11 }
  0xb5   :  { %v1984_v15 = vpop.permute.xlu1 %321  ;;  %v303_v16 = vpop.permute.xlu0 %302 }
  0xb6   :  { %v304_v48 = vrot.slane %v303_v16, 2  ;;  %v323_v30 = vrot.slane %v1984_v15, 2 }
  0xb7   :  { %1131 = vrot.lane.b32.xlu1 %v1129_v10, %s1664_s7  ;;  %982 = vrot.lane.b32.xlu0 %v980_v11, %s1664_s7 }
  0xb8   :  { %v305_v60 = vsel %vm295_vm5, %v303_v16, %v304_v48 }
  0xb9   :  { %v1990_v21 = vpop.permute.xlu1 %467  ;;  %v1992_v25 = vpop.permute.xlu0 %625 }
  0xba   :  { %v469_v61 = vrot.slane %v1990_v21, 2  ;;  %v627_v9 = vrot.slane %v1992_v25, 2 }
  0xbb   :  { %848 = vrot.lane.b32.xlu1 %v846_v17, %s1665_s23  ;;  %1280 = vrot.lane.b32.xlu0 %v1278_v18, %s1663_s22  ;;  %s2010_s22 = sld [smem:[#allocation3 + $0x28]] }
  0xbc   :  { %v470_v17 = vsel %vm295_vm5, %v1990_v21, %v469_v61  ;;  %v628_v36 = vsel %vm295_vm5, %v1992_v25, %v627_v9  ;;  %v1156_v25 = vmul.f32 %v1155_v7, %v1931_v12 }
  0xbd   :  { %v2002_v31 = vpop.permute.xlu1 %783  ;;  %v2004_v32 = vpop.permute.xlu0 %485 }
  0xbe   :  { %v785_v22 = vrot.slane %v2002_v31, 2 }
  0xbf   :  { %557 = vrot.lane.b32.xlu1 %v555_v26, %s1666_s11  ;;  %399 = vrot.lane.b32.xlu0 %v397_v27, %s1666_s11 }
  0xc0   :  { %v786_v9 = vsel %vm295_vm5, %v2002_v31, %v785_v22 }
  0xc1   :  { %v2014_v37 = vpop.permute.xlu1 %928  ;;  %v2016_v38 = vpop.permute.xlu0 %643  ;;  %v1146_v55 = vstv %s2010_s22 }
  0xc2   :  { %v1147_v2 = vmul.f32 %v1146_v55, %v1914_v56  ;;  %v324_v55 = vsel %vm314_vm6, %v1984_v15, %v323_v30 }
  0xc3   :  { %991 = vrot.lane.b32.xlu1 %v989_v33, %s1665_s23  ;;  %706 = vrot.lane.b32.xlu0 %v704_v35, %s1666_s11 }
  0xc5   :  { %v312_v45 = vpop.permute.xlu1 %311  ;;  %v293_v47 = vpop.permute.xlu0 %292 }
  0xc6   :  { %v294_v49 = vrot.slane %v293_v47, 2  ;;  %v313_v53 = vrot.slane %v312_v45, 2 }
  0xc7   :  { %1289 = vrot.lane.b32.xlu1 %v1287_v39, %s1664_s7  ;;  %1140 = vrot.lane.b32.xlu0 %v1138_v42, %s1664_s7 }
  0xc8   :  { %v296_v54 = vsel %vm295_vm5, %v293_v47, %v294_v49  ;;  %v315_v4 = vsel %vm314_vm6, %v312_v45, %v313_v53  ;;  %v487_v45 = vrot.slane %v2004_v32, 2  ;;  %v930_v47 = vrot.slane %v2014_v37, 2 }
  0xc9   :  { %v298_v57 = vadd.f32 %v296_v54, %v1833_v1  ;;  %v477_v58 = vpop.permute.xlu1 %476  ;;  %v459_v59 = vpop.permute.xlu0 %458  ;;  %v1295_v1 = vstv %s2024_s25  ;;  %v873_v53 = vmul.f32 %v872_v29, %v1931_v12 }
  0xca   :  { %v460_v62 = vrot.slane %v459_v59, 2  ;;  %v478_v5 = vrot.slane %v477_v58, 2  ;;  %v1296_v27 = vmul.f32 %v1295_v1, %v1931_v12  ;;  %v488_v61 = vsel %vm314_vm6, %v2004_v32, %v487_v45 }
  0xcb   :  { %v307_v0 = vadd.f32 %v305_v60, %v298_v57  ;;  %715 = vrot.lane.b32.xlu1 %v713_v50, %s1666_s11  ;;  %857 = vrot.lane.b32.xlu0 %v855_v52, %s1665_s23 }
  0xcc   :  { %v461_v6 = vsel %vm295_vm5, %v459_v59, %v460_v62  ;;  %v479_v33 = vsel %vm314_vm6, %v477_v58, %v478_v5  ;;  %v931_v62 = vsel %vm295_vm5, %v2014_v37, %v930_v47  ;;  %v1015_v5 = vstv %s2072_s4 }
  0xcd   :  { %v463_v10 = vadd.f32 %v461_v6, %v1847_v8  ;;  %v775_v11 = vpop.permute.xlu1 %774  ;;  %v617_v13 = vpop.permute.xlu0 %616  ;;  %v317_v16 = vadd.f32 %v315_v4, %v307_v0  ;;  %v1304_v8 = vstv %s2038_s29  ;;  %v1164_v4 = vstv %s2070_s30 }
  0xce   :  { %v776_v18 = vrot.slane %v775_v11, 2  ;;  %v618_v19 = vrot.slane %v617_v13, 2  ;;  %v1305_v54 = vmul.f32 %v1304_v8, %v1914_v56  ;;  %v645_v8 = vrot.slane %v2016_v38, 2 }
  0xcf   :  { %v472_v26 = vadd.f32 %v470_v17, %v463_v10  ;;  %1149 = vrot.lane.b32.xlu1 %v1147_v2, %s1665_s23  ;;  %1000 = vrot.lane.b32.xlu0 %v998_v3, %s1665_s23  ;;  %v326_v3 = vadd.f32 %v324_v55, %v317_v16  ;;  %v1016_v16 = vmul.f32 %v1015_v5, %v1931_v12 }
  0xd0   :  { %v777_v35 = vsel %vm295_vm5, %v775_v11, %v776_v18  ;;  %v619_v21 = vsel %vm295_vm5, %v617_v13, %v618_v19  ;;  %v1173_v19 = vstv %s2088_s6  ;;  %v646_v47 = vsel %vm314_vm6, %v2016_v38, %v645_v8 }
  0xd1   :  { %v779_v46 = vadd.f32 %v777_v35, %v1872_v23  ;;  %v621_v39 = vadd.f32 %v619_v21, %v1874_v24  ;;  %v635_v42 = vpop.permute.xlu1 %634  ;;  %v920_v43 = vpop.permute.xlu0 %919  ;;  %v481_v44 = vadd.f32 %v479_v33, %v472_v26  ;;  %v1007_v23 = vmul.f32 %v1006_v20, %v1914_v56 }
  0xd2   :  { %v636_v48 = vrot.slane %v635_v42, 2  ;;  %v921_v49 = vrot.slane %v920_v43, 2  ;;  %v1313_v20 = vstv %s2090_s15  ;;  %v1174_v35 = vmul.f32 %v1173_v19, %v1931_v12 }
  0xd3   :  { %v630_v50 = vadd.f32 %v628_v36, %v621_v39  ;;  %866 = vrot.lane.b32.xlu1 %v864_v14, %s1666_s11  ;;  %1298 = vrot.lane.b32.xlu0 %v1296_v27, %s1664_s7  ;;  %v490_v2 = vadd.f32 %v488_v61, %v481_v44  ;;  %s2106_s7 = sld [smem:[#allocation3 + $0x30]]  ;;  %v788_v13 = vadd.f32 %v786_v9, %v779_v46 }
  0xd4   :  { %v637_v24 = vsel %vm314_vm6, %v635_v42, %v636_v48  ;;  %v922_v52 = vsel %vm295_vm5, %v920_v43, %v921_v49  ;;  %v1165_v14 = vmul.f32 %v1164_v4, %v1914_v56  ;;  %v1314_v21 = vmul.f32 %v1313_v20, %v1931_v12 }
  0xd5   :  { %v639_v57 = vadd.f32 %v637_v24, %v630_v50  ;;  %v924_v58 = vadd.f32 %v922_v52, %v1888_v34  ;;  %v495_v59 = vpop.permute.xlu1 %494  ;;  %v331_v60 = vpop.permute.xlu0 %330 }
  0xd6   :  { %v496_v63 = vrot.slane %v495_v59, 2  ;;  %v332_v0 = vrot.slane %v331_v60, 2 }
  0xd7   :  { %1158 = vrot.lane.b32.xlu1 %v1156_v25, %s1665_s23  ;;  %1009 = vrot.lane.b32.xlu0 %v1007_v23, %s1666_s11  ;;  %v933_v15 = vadd.f32 %v931_v62, %v924_v58  ;;  %v648_v50 = vadd.f32 %v646_v47, %v639_v57 }
  0xd8   :  { %v497_v1 = vsel %vm333_vm7, %v495_v59, %v496_v63  ;;  %v334_v34 = vsel %vm333_vm7, %v331_v60, %v332_v0 }
  0xd9   :  { %v499_v32 = vadd.f32 %v497_v1, %v490_v2  ;;  %v336_v37 = vadd.f32 %v334_v34, %v326_v3  ;;  %v793_v6 = vpop.permute.xlu1 %792  ;;  %v1078_v7 = vpop.permute.xlu0 %1077  ;;  %v1322_v39 = vstv %s2106_s7 }
  0xda   :  { %v794_v10 = vrot.slane %v793_v6, 2  ;;  %v1079_v11 = vrot.slane %v1078_v7, 2  ;;  %v1323_v25 = vmul.f32 %v1322_v39, %v1914_v56 }
  0xdb   :  { %875 = vrot.lane.b32.xlu1 %v873_v53, %s1666_s11  ;;  %1307 = vrot.lane.b32.xlu0 %v1305_v54, %s1665_s23 }
  0xdc   :  { %v795_v17 = vsel %vm314_vm6, %v793_v6, %v794_v10  ;;  %v1080_v18 = vsel %vm295_vm5, %v1078_v7, %v1079_v11 }
  0xdd   :  { %v797_v31 = vadd.f32 %v795_v17, %v788_v13  ;;  %v1082_v26 = vadd.f32 %v1080_v18, %v1897_v40  ;;  %v504_v27 = vpop.permute.xlu1 %503  ;;  %v341_v29 = vpop.permute.xlu0 %340  ;;  %v1331_v40 = vstv %s2108_s2 }
  0xde   :  { %v505_v30 = vrot.slane %v504_v27, 2  ;;  %v342_v33 = vrot.slane %v341_v29, 2  ;;  %v1332_v23 = vmul.f32 %v1331_v40, %v1931_v12 }
  0xdf   :  { %1167 = vrot.lane.b32.xlu1 %v1165_v14, %s1666_s11  ;;  %1018 = vrot.lane.b32.xlu0 %v1016_v16, %s1666_s11 }
  0xe0   :  { %v506_v36 = vsel %vm333_vm7, %v504_v27, %v505_v30  ;;  %v343_v46 = vsel %vm333_vm7, %v341_v29, %v342_v33 }
  0xe1   :  { %v2130_v42 = vadd.f32 %v506_v36, %v499_v32  ;;  %v345_v43 = vadd.f32 %v343_v46, %v336_v37  ;;  %v938_v44 = vpop.permute.xlu1 %937  ;;  %v653_v45 = vpop.permute.xlu0 %652 }
  0xe2   :  { %v939_v48 = vrot.slane %v938_v44, 2  ;;  %v654_v49 = vrot.slane %v653_v45, 2 }
  0xe3   :  { %1176 = vrot.lane.b32.xlu1 %v1174_v35, %s1666_s11  ;;  %1316 = vrot.lane.b32.xlu0 %v1314_v21, %s1665_s23 }
  0xe4   :  { %v940_v24 = vsel %vm314_vm6, %v938_v44, %v939_v48  ;;  %v655_v52 = vsel %vm333_vm7, %v653_v45, %v654_v49 }
  0xe5   :  { %v942_v53 = vadd.f32 %v940_v24, %v933_v15  ;;  %v657_v54 = vadd.f32 %v655_v52, %v648_v50  ;;  %v1236_v55 = vpop.permute.xlu1 %1235  ;;  %v1087_v22 = vpop.permute.xlu0 %1086 }
  0xe6   :  { %v1237_v38 = vrot.slane %v1236_v55, 2  ;;  %v1088_v58 = vrot.slane %v1087_v22, 2 }
  0xe7   :  { %1325 = vrot.lane.b32.xlu0 %v1323_v25, %s1666_s11  ;;  %1334 = vrot.lane.b32.xlu1 %v1332_v23, %s1666_s11  ;;  %s1670_s11 = smov 47  }
  0xe8   :  { %v1238_v57 = vsel %vm295_vm5, %v1236_v55, %v1237_v38  ;;  %v1089_v56 = vsel %vm295_vm5, %v1087_v22, %v1088_v58 }
  0xe9   :  { %v1240_v12 = vadd.f32 %v1238_v57, %v1907_v51  ;;  %v1091_v59 = vadd.f32 %v1089_v56, %v1082_v26  ;;  %v351_v60 = vpop.permute.xlu1 %350  ;;  %v802_v61 = vpop.permute.xlu0 %801 }
  0xea   :  { %v352_v62 = vrot.slane %v351_v60, 6  ;;  %v803_v63 = vrot.slane %v802_v61, 2 }
  0xec   :  { %v354_v0 = vsel %vm353_vm8, %v352_v62, %v351_v60  ;;  %v804_v2 = vsel %vm314_vm6, %v802_v61, %v803_v63 }
  0xed   :  { %v2147_v3 = vadd.f32 %v354_v0, %v345_v43  ;;  %v806_v15 = vadd.f32 %v804_v2, %v797_v31  ;;  %v662_v1 = vpop.permute.xlu1 %661  ;;  %v2149_v34 = vpop.permute.xlu0 %512 }
  0xee   :  { %v663_v4 = vrot.slane %v662_v1, 2  ;;  %v514_v2 = vrot.slane %v2149_v34, 6 }
  0xf0   :  { %v664_v5 = vsel %vm333_vm7, %v662_v1, %v663_v4 }
  0xf1   :  { %v2152_v51 = vadd.f32 %v664_v5, %v657_v54  ;;  %v1096_v32 = vpop.permute.xlu1 %1095  ;;  %v947_v37 = vpop.permute.xlu0 %946 }
  0xf2   :  { %v1097_v6 = vrot.slane %v1096_v32, 2  ;;  %v948_v7 = vrot.slane %v947_v37, 2 }
  0xf4   :  { %v1098_v9 = vsel %vm314_vm6, %v1096_v32, %v1097_v6  ;;  %v949_v10 = vsel %vm314_vm6, %v947_v37, %v948_v7  ;;  %v515_v32 = vsel %vm353_vm8, %v514_v2, %v2149_v34 }
  0xf5   :  { %v1100_v11 = vadd.f32 %v1098_v9, %v1091_v59  ;;  %v951_v13 = vadd.f32 %v949_v10, %v942_v53  ;;  %v812_v14 = vpop.permute.xlu1 %811  ;;  %v1245_v16 = vpop.permute.xlu0 %1244 }
  0xf6   :  { %v813_v17 = vrot.slane %v812_v14, 6  ;;  %v1246_v18 = vrot.slane %v1245_v16, 2 }
  0xf8   :  { %v814_v19 = vsel %vm333_vm7, %v813_v17, %v812_v14  ;;  %v1247_v20 = vsel %vm295_vm5, %v1245_v16, %v1246_v18  ;;  %v517_v16 = vadd.f32 %v515_v32, %v2130_v42 }
  0xf9   :  { %v2158_v31 = vadd.f32 %v814_v19, %v806_v15  ;;  %v1249_v26 = vadd.f32 %v1247_v20, %v1240_v12  ;;  %v522_v27 = vpop.permute.xlu1 %521  ;;  %v362_v29 = vpop.permute.xlu0 %361 }
  0xfa   :  { %v523_v4 = vrot.slane %v522_v27, 6  ;;  %v363_v5 = vrot.slane %v362_v29, 6 }
  0xfc   :  { %v524_v10 = vsel %vm353_vm8, %v523_v4, %v522_v27 }
  0xfd   :  { %v956_v8 = vpop.permute.xlu1 %955  ;;  %v2160_v30 = vpop.permute.xlu0 %670  ;;  %v526_v20 = vadd.f32 %v524_v10, %v517_v16 }
  0xfe   :  { %v957_v33 = vrot.slane %v956_v8, 6 }
 0x100   :  { %v958_v35 = vsel %vm333_vm7, %v957_v33, %v956_v8 }
 0x101   :  { %v2163_v21 = vadd.f32 %v958_v35, %v951_v13  ;;  %v1254_v36 = vpop.permute.xlu1 %1253  ;;  %v1105_v46 = vpop.permute.xlu0 %1104 }
 0x102   :  { %v1255_v39 = vrot.slane %v1254_v36, 2  ;;  %v1106_v40 = vrot.slane %v1105_v46, 2 }
 0x104   :  { %v1256_v43 = vsel %vm314_vm6, %v1254_v36, %v1255_v39  ;;  %v1107_v44 = vsel %vm314_vm6, %v1105_v46, %v1106_v40  ;;  %v672_v36 = vrot.slane %v2160_v30, 6 }
 0x105   :  { %v1258_v45 = vadd.f32 %v1256_v43, %v1249_v26  ;;  %v1109_v47 = vadd.f32 %v1107_v44, %v1100_v11  ;;  %v371_v48 = vpop.permute.xlu1 %370  ;;  %v2167_v49 = vpop.permute.xlu0 %821  ;;  %v364_v11 = vsel %vm353_vm8, %v363_v5, %v362_v29 }
 0x106   :  { %v372_v37 = vrot.slane %v371_v48, 6  ;;  %v366_v26 = vadd.f32 %v364_v11, %v2147_v3 }
 0x108   :  { %v374_v17 = vsel %vm373_vm9, %v372_v37, %v371_v48 }
 0x109   :  { %v2169_v50 = vpop.permute.xlu1 %679  ;;  %v531_v25 = vpop.permute.xlu0 %530  ;;  %v376_v35 = vadd.f32 %v374_v17, %v366_v26 }
 0x10a   :  { %v532_v6 = vrot.slane %v531_v25, 6 }
 0x10c   :  { %v533_v18 = vsel %vm373_vm9, %v532_v6, %v531_v25 }
 0x10d   :  { %v1114_v23 = vpop.permute.xlu1 %1113  ;;  %v2171_v24 = vpop.permute.xlu0 %964  ;;  %v535_v42 = vadd.f32 %v533_v18, %v526_v20 }
 0x10e   :  { %v1115_v52 = vrot.slane %v1114_v23, 6  ;;  %v966_v18 = vrot.slane %v2171_v24, 6 }
 0x110   :  { %v1116_v53 = vsel %vm333_vm7, %v1115_v52, %v1114_v23  ;;  %v673_v52 = vsel %vm353_vm8, %v672_v36, %v2160_v30 }
 0x111   :  { %v2174_v54 = vadd.f32 %v1116_v53, %v1109_v47  ;;  %v2176_v55 = vpop.permute.xlu1 %830  ;;  %v1263_v22 = vpop.permute.xlu0 %1262  ;;  %v675_v4 = vadd.f32 %v673_v52, %v2152_v51 }
 0x112   :  { %v1264_v38 = vrot.slane %v1263_v22, 2  ;;  %v832_v20 = vrot.slane %v2176_v55, 6 }
 0x114   :  { %v1265_v58 = vsel %vm314_vm6, %v1263_v22, %v1264_v38 }
 0x115   :  { %v2179_v57 = vadd.f32 %v1265_v58, %v1258_v45  ;;  %v540_v56 = vpop.permute.xlu1 %539  ;;  %v381_v12 = vpop.permute.xlu0 %380  ;;  %v681_v45 = vrot.slane %v2169_v50, 6 }
 0x116   :  { %v541_v13 = vrot.slane %v540_v56, 6  ;;  %v382_v14 = vrot.slane %v381_v12, 6 }
 0x117   :  { %v682_v2 = vsel %vm353_vm8, %v681_v45, %v2169_v50 }
 0x118   :  { %v542_v27 = vsel %vm373_vm9, %v541_v13, %v540_v56  ;;  %v383_v29 = vsel %vm373_vm9, %v382_v14, %v381_v12  ;;  %v684_v6 = vadd.f32 %v682_v2, %v675_v4  ;;  %v823_v13 = vrot.slane %v2167_v49, 6 }
 0x119   :  { %v2181_v59 = vpop.permute.xlu1 %973  ;;  %v689_v60 = vpop.permute.xlu0 %688  ;;  %v544_v40 = vadd.f32 %v542_v27, %v535_v42  ;;  %v385_v43 = vadd.f32 %v383_v29, %v376_v35 }
 0x11a   :  { %v690_v53 = vrot.slane %v689_v60, 6  ;;  %v824_v27 = vsel %vm333_vm7, %v823_v13, %v2167_v49 }
 0x11c   :  { %v691_v32 = vsel %vm373_vm9, %v690_v53, %v689_v60 }
 0x11d   :  { %v2183_v61 = vpop.permute.xlu1 %1271  ;;  %v2185_v62 = vpop.permute.xlu0 %1122  ;;  %v693_v50 = vadd.f32 %v691_v32, %v684_v6 }
 0x11e   :  { %v1273_v29 = vrot.slane %v2183_v61, 6 }
 0x121   :  { %v390_v63 = vpop.permute.xlu1 %389  ;;  %v2187_v0 = vpop.permute.xlu0 %839 }
 0x122   :  { %v391_v34 = vrot.slane %v390_v63, 6 }
 0x124   :  { %v393_v46 = vsel %vm392_vm10, %v391_v34, %v390_v63 }
 0x125   :  { %v2190_v15 = vpop.permute.xlu1 %697  ;;  %v549_v1 = vpop.permute.xlu0 %548  ;;  %v395_v25 = vadd.f32 %v393_v46, %v385_v43  ;;  %v967_v46 = vsel %vm333_vm7, %v966_v18, %v2171_v24 }
 0x126   :  { %v550_v19 = vrot.slane %v549_v1, 6 }
 0x128   :  { %v551_v39 = vsel %vm392_vm10, %v550_v19, %v549_v1  ;;  %v699_v1 = vrot.slane %v2190_v15, 6 }
 0x129   :  { %v2194_v7 = vpop.permute.xlu1 %1131  ;;  %v2196_v9 = vpop.permute.xlu0 %982  ;;  %v553_v23 = vadd.f32 %v551_v39, %v544_v40  ;;  %v1124_v39 = vrot.slane %v2185_v62, 6  ;;  %v841_v40 = vrot.slane %v2187_v0, 6 }
 0x12a   :  { %v700_v51 = vsel %vm373_vm9, %v699_v1, %v2190_v15  ;;  %v975_v15 = vrot.slane %v2181_v59, 6 }
 0x12b   :  { %v702_v14 = vadd.f32 %v700_v51, %v693_v50 }
 0x12c   :  { %v976_v24 = vsel %vm353_vm8, %v975_v15, %v2181_v59 }
 0x12d   :  { %v2204_v8 = vpop.permute.xlu1 %848  ;;  %v2206_v33 = vpop.permute.xlu0 %1280 }
 0x12e   :  { %v850_v45 = vrot.slane %v2204_v8, 6 }
 0x131   :  { %v558_v3 = vpop.permute.xlu1 %557  ;;  %v400_v44 = vpop.permute.xlu0 %399 }
 0x132   :  { %v559_v47 = vrot.slane %v558_v3, 6  ;;  %v401_v48 = vrot.slane %v400_v44, 6 }
 0x134   :  { %v560_v22 = vsel %vm392_vm10, %v559_v47, %v558_v3  ;;  %v402_v38 = vsel %vm392_vm10, %v401_v48, %v400_v44  ;;  %v826_v3 = vadd.f32 %v824_v27, %v2158_v31  ;;  %v833_v44 = vsel %vm353_vm8, %v832_v20, %v2176_v55 }
 0x135   :  { %v2218_v58 = vadd.f32 %v560_v22, %v553_v23  ;;  %v404_v56 = vadd.f32 %v402_v38, %v395_v25  ;;  %v2220_v12 = vpop.permute.xlu1 %991  ;;  %v707_v63 = vpop.permute.xlu0 %706  ;;  %v969_v47 = vadd.f32 %v967_v46, %v2163_v21  ;;  %v1274_v48 = vsel %vm333_vm7, %v1273_v29, %v2183_v61 }
 0x136   :  { %v708_v37 = vrot.slane %v707_v63, 6  ;;  %v1133_v25 = vrot.slane %v2194_v7, 6  ;;  %v1125_v31 = vsel %vm333_vm7, %v1124_v39, %v2185_v62  ;;  %v842_v21 = vsel %vm353_vm8, %v841_v40, %v2187_v0 }
 0x137   :  { %v2228_v30 = vrot.slane %v2218_v58, %v1733_v41  ;;  %v2231_v5 = vrot.slane %v404_v56, %v1733_v41  ;;  %v418_v43 = vcombine.high %v404_v56, %v404_v56  ;;  %v984_v55 = vrot.slane %v2196_v9, 6 }
 0x138   :  { %v709_v60 = vsel %vm392_vm10, %v708_v37, %v707_v63  ;;  %v835_v53 = vadd.f32 %v833_v44, %v826_v3  ;;  %v978_v22 = vadd.f32 %v976_v24, %v969_v47  ;;  %v851_v38 = vsel %vm373_vm9, %v850_v45, %v2204_v8 }
 0x139   :  { %v2234_v10 = vpop.permute.xlu1 %1289  ;;  %v2236_v11 = vpop.permute.xlu0 %1140  ;;  %592 = vrot.lane.b32.xlu1 %v2228_v30, %s1667_s8  ;;  %434 = vrot.lane.b32.xlu0 %v2231_v5, %s1668_s9  ;;  %v711_v19 = vadd.f32 %v709_v60, %v702_v14  ;;  %v432_v61 = vrot.slane %v418_v43, %v1733_v41  ;;  %v993_v56 = vrot.slane %v2220_v12, 6  ;;  %v1276_v2 = vadd.f32 %v1274_v48, %v2179_v57 }
 0x13a   :  { %v1127_v62 = vadd.f32 %v1125_v31, %v2174_v54  ;;  %v844_v1 = vadd.f32 %v842_v21, %v835_v53  ;;  %v1134_v0 = vsel %vm353_vm8, %v1133_v25, %v2194_v7  ;;  %v985_v37 = vsel %vm353_vm8, %v984_v55, %v2196_v9 }
 0x13b   :  { %v1142_v8 = vrot.slane %v2236_v11, 6  ;;  %v1282_v57 = vrot.slane %v2206_v33, 6  ;;  %v591_v7 = vcombine.high %v2228_v30, %v2228_v30  ;;  %v994_v60 = vsel %vm373_vm9, %v993_v56, %v2220_v12 }
 0x13c   :  { %v853_v50 = vadd.f32 %v851_v38, %v844_v1  ;;  %v1291_v18 = vrot.slane %v2234_v10, 6 }
 0x13d   :  { %v716_v16 = vpop.permute.xlu1 %715  ;;  %v858_v17 = vpop.permute.xlu0 %857  ;;  %v1143_v30 = vsel %vm353_vm8, %v1142_v8, %v2236_v11  ;;  %v1283_v15 = vsel %vm333_vm7, %v1282_v57, %v2206_v33 }
 0x13e   :  { %v717_v34 = vrot.slane %v716_v16, 6  ;;  %v859_v59 = vrot.slane %v858_v17, 6 }
 0x140   :  { %v718_v26 = vsel %vm392_vm10, %v717_v34, %v716_v16  ;;  %v860_v6 = vsel %vm373_vm9, %v859_v59, %v858_v17  ;;  %v1136_v16 = vadd.f32 %v1134_v0, %v1127_v62  ;;  %v987_v17 = vadd.f32 %v985_v37, %v978_v22 }
 0x141   :  { %v2253_v35 = vadd.f32 %v718_v26, %v711_v19  ;;  %v2255_v42 = vpop.permute.xlu1 %1149  ;;  %v1001_v36 = vpop.permute.xlu0 %1000  ;;  %v862_v34 = vadd.f32 %v860_v6, %v853_v50  ;;  %v433_v37 = vcombine.high %v2231_v5, %v2231_v5 }
 0x142   :  { %v1002_v51 = vrot.slane %v1001_v36, 6  ;;  %v1151_v13 = vrot.slane %v2255_v42, 6  ;;  %v996_v29 = vadd.f32 %v994_v60, %v987_v17  ;;  %v1145_v3 = vadd.f32 %v1143_v30, %v1136_v16 }
 0x143   :  { %v2263_v49 = vrot.slane %v2253_v35, %v1733_v41  ;;  %v734_v54 = vcombine.high %v2253_v35, %v2253_v35 }
 0x144   :  { %v1003_v26 = vsel %vm373_vm9, %v1002_v51, %v1001_v36  ;;  %v1152_v39 = vsel %vm373_vm9, %v1151_v13, %v2255_v42  ;;  %v1292_v36 = vsel %vm353_vm8, %v1291_v18, %v2234_v10 }
 0x145   :  { %v867_v23 = vpop.permute.xlu1 %866  ;;  %v2275_v52 = vpop.permute.xlu0 %1298  ;;  %750 = vrot.lane.b32.xlu0 %v2263_v49, %s1669_s10  ;;  %v748_v46 = vrot.slane %v734_v54, %v1733_v41  ;;  %v1005_v44 = vadd.f32 %v1003_v26, %v996_v29  ;;  %v1154_v31 = vadd.f32 %v1152_v39, %v1145_v3 }
 0x146   :  { %v868_v63 = vrot.slane %v867_v23, 6  ;;  %v1300_v40 = vrot.slane %v2275_v52, 6 }
 0x148   :  { %v869_v9 = vsel %vm392_vm10, %v868_v63, %v867_v23  ;;  %v1285_v23 = vadd.f32 %v1283_v15, %v1276_v2  ;;  %v1301_v10 = vsel %vm353_vm8, %v1300_v40, %v2275_v52 }
 0x149   :  { %v1159_v4 = vpop.permute.xlu1 %1158  ;;  %v1010_v32 = vpop.permute.xlu0 %1009  ;;  %438 = vrot.lane.b32.xlu0 %v432_v61, %s1668_s9  ;;  %v871_v35 = vadd.f32 %v869_v9, %v862_v34 }
 0x14a   :  { %v1011_v14 = vrot.slane %v1010_v32, 6  ;;  %v1160_v12 = vrot.slane %v1159_v4, 6  ;;  %v1294_v61 = vadd.f32 %v1292_v36, %v1285_v23 }
 0x14c   :  { %v1012_v43 = vsel %vm392_vm10, %v1011_v14, %v1010_v32  ;;  %v1161_v24 = vsel %vm373_vm9, %v1160_v12, %v1159_v4  ;;  %v576_v4 = vcombine.high %v2218_v58, %v2218_v58  ;;  %v1303_v52 = vadd.f32 %v1301_v10, %v1294_v61 }
 0x14d   :  { %v876_v19 = vpop.permute.xlu1 %875  ;;  %v1308_v20 = vpop.permute.xlu0 %1307  ;;  %594 = vrot.lane.b32.xlu0 %v591_v7, %s1667_s8  ;;  %v1014_v21 = vadd.f32 %v1012_v43, %v1005_v44  ;;  %v1163_v22 = vadd.f32 %v1161_v24, %v1154_v31 }
 0x14e   :  { %v877_v27 = vrot.slane %v876_v19, 6  ;;  %v1309_v48 = vrot.slane %v1308_v20, 6  ;;  %v590_v5 = vrot.slane %v576_v4, %v1733_v41 }
 0x150   :  { %v878_v11 = vsel %vm392_vm10, %v877_v27, %v876_v19  ;;  %v1310_v2 = vsel %vm373_vm9, %v1309_v48, %v1308_v20  ;;  %v749_v20 = vcombine.high %v2263_v49, %v2263_v49 }
 0x151   :  { %v880_v45 = vadd.f32 %v878_v11, %v871_v35  ;;  %v1168_v33 = vpop.permute.xlu1 %1167  ;;  %v1019_v47 = vpop.permute.xlu0 %1018  ;;  %754 = vrot.lane.b32.xlu0 %v748_v46, %s1669_s10  ;;  %v1312_v51 = vadd.f32 %v1310_v2, %v1303_v52 }
 0x152   :  { %v1169_v42 = vrot.slane %v1168_v33, 6  ;;  %v1020_v25 = vrot.slane %v1019_v47, 6 }
 0x153   :  { %v889_v55 = vrot.slane %v880_v45, %v1733_v41  ;;  %v882_v19 = vcombine.high %v880_v45, %v880_v45 }
 0x154   :  { %v1170_v59 = vsel %vm392_vm10, %v1169_v42, %v1168_v33  ;;  %v1021_v53 = vsel %vm392_vm10, %v1020_v25, %v1019_v47  ;;  %v280_v47 = vld [vmem:[%s2470_s1] sm:$0x3]  ;;  %v1673_v25 = vmov 0   ;;  %s1675_s1 = smov [#allocation8]  }
 0x155   :  { %v1023_v38 = vadd.f32 %v1021_v53, %v1014_v21  ;;  %v1177_v56 = vpop.permute.xlu1 %1176  ;;  %v1317_v63 = vpop.permute.xlu0 %1316  ;;  %898 = vrot.lane.b32.xlu1 %v889_v55, %s1665_s23  ;;  %v897_v62 = vcombine.high %v889_v55, %v889_v55  ;;  %v1172_v32 = vadd.f32 %v1170_v59, %v1163_v22  ;;  %v896_v12 = vrot.slane %v882_v19, %v1733_v41  ;;  %s1452_s17 = sshll.u32 %s1675_s1, 4  ;;  %s1453_s17 = int_to_ptr.vmem [resolvable:$true] %s1452_s17 }
 0x156   :  { %v1178_v1 = vrot.slane %v1177_v56, 6  ;;  %v1318_v0 = vrot.slane %v1317_v63, 6  ;;  %vm563_vm11 = vcmp.ge.s32.totalorder %v280_v47, 2  ;;  %vm405_vm12 = vcmp.ge.s32.totalorder %v280_v47, 3  ;;  %s1627_s16 = scalar_lea.vmem %s1453_s17, 256  ;;  %p1632_p12 = scmp.lt.s32.totalorder %s1453_s17, %s1453_s17 }
 0x157   :  { %900 = vrot.lane.b32.xlu0 %v897_v62, %s1665_s23  ;;  %v1037_v50 = vcombine.high %v1023_v38, %v1023_v38  ;;  %v1044_v58 = vrot.slane %v1023_v38, %v1733_v41  ;;  %vm721_vm13 = vcmp.ge.s32.totalorder %v280_v47, 1  ;;  %v564_v23 = vsel %vm563_vm11, 1, %v1673_v25  ;;  %p1628_p11 = scmp.ne.s32.totalorder %s1453_s17, %s1627_s16  ;;  %p1633_p13 = scmp.lt.s32.totalorder %s1627_s16, %s1627_s16 }
 0x158   :  { %v1179_v8 = vsel %vm392_vm10, %v1178_v1, %v1177_v56  ;;  %v1319_v6 = vsel %vm373_vm9, %v1318_v0, %v1317_v63  ;;  %v406_v31 = vsel %vm405_vm12, 1, %v1673_v25  ;;  %v2364_v21 = vsub.s32 1, %v1728_v28 }
 0x159   :  { %v1181_v57 = vadd.f32 %v1179_v8, %v1172_v32  ;;  %v1326_v54 = vpop.permute.xlu0 %1325  ;;  %436 = vrot.lane.b32.xlu1 %v433_v37, %s1668_s9  ;;  %v1335_v7 = vpop.permute.xlu1 %1334  ;;  %v1321_v9 = vadd.f32 %v1319_v6, %v1312_v51  ;;  %v1051_v16 = vrot.slane %v1037_v50, %v1733_v41  ;;  %v1052_v29 = vcombine.high %v1044_v58, %v1044_v58  ;;  %p1634_p0 = por %p1633_p13, %p1632_p12 }
 0x15a   :  { %v1327_v60 = vrot.slane %v1326_v54, 6  ;;  %v1336_v13 = vrot.slane %v1335_v7, 6  ;;  %v722_v55 = vsel %vm721_vm13, 1, %v1673_v25  ;;  %v572_v61 = vrot.slane %v564_v23, %v2364_v21 }
 0x15b   :  { %1053 = vrot.lane.b32.xlu0 %v1044_v58, %s1670_s11  ;;  %v1202_v17 = vrot.slane %v1181_v57, %v1733_v41  ;;  %v1195_v49 = vcombine.high %v1181_v57, %v1181_v57  ;;  %v414_v22 = vrot.slane %v406_v31, %v2364_v21  ;;  %v730_v63 = vrot.slane %v722_v55, %v2364_v21  ;;  %p1635_p1 = pnand %p1634_p0, %p1628_p11 }
 0x15c   :  { %v1328_v14 = vsel %vm392_vm10, %v1327_v60, %v1326_v54  ;;  %v1337_v34 = vsel %vm392_vm10, %v1336_v13, %v1335_v7  ;;  %vm1024_vm15 = vcmp.lt.s32.totalorder %v280_v47, 15  ;;  %vm1182_vm0 = vcmp.lt.s32.totalorder %v280_v47, 14 }
 0x15d   :  { %v1330_v18 = vadd.f32 %v1328_v14, %v1321_v9  ;;  %596 = vrot.lane.b32.xlu1 %v590_v5, %s1667_s8  ;;  %v1210_v30 = vcombine.high %v1202_v17, %v1202_v17  ;;  %v1209_v46 = vrot.slane %v1195_v49, %v1733_v41  ;;  %vm2381_vm5 = vcmp.eq.s32.totalorder %v572_v61, 1 }
 0x15e   :  { %v1025_v32 = vsel %vm1024_vm15, 1, %v1673_v25  ;;  %vm2385_vm6 = vcmp.eq.s32.totalorder %v414_v22, 1  ;;  %vm2393_vm8 = vcmp.eq.s32.totalorder %v730_v63, 1  ;;  %v1183_v51 = vsel %vm1182_vm0, 1, %v1673_v25 }
 0x15f   :  { %1057 = vrot.lane.b32.xlu0 %v1051_v16, %s1670_s11  ;;  %v1339_v26 = vadd.f32 %v1337_v34, %v1330_v18  ;;  %v1033_v5 = vrot.slane %v1025_v32, %v2364_v21  ;;  %vm1059_vm10 = vcmask 384000   ;;  %vm1340_vm11 = vcmp.lt.s32.totalorder %v280_v47, 13 }
 0x161   :  { %752 = vrot.lane.b32.xlu1 %v749_v20, %s1669_s10  ;;  %v1353_v27 = vcombine.high %v1339_v26, %v1339_v26  ;;  %v1360_v15 = vrot.slane %v1339_v26, %v1733_v41  ;;  %v1191_v26 = vrot.slane %v1183_v51, %v2364_v21  ;;  %vm2418_vm13 = vcmp.eq.s32.totalorder %v1033_v5, 1 }
 0x163   :  { %1213 = vrot.lane.b32.xlu0 %v1210_v30, %s1671_s12  ;;  %v1367_v35 = vrot.slane %v1353_v27, %v1733_v41  ;;  %v1368_v39 = vcombine.high %v1360_v15, %v1360_v15  ;;  %v2361_v41 = vsub.s32 0, %v1728_v28  ;;  %vm2431_vm0 = vcmp.eq.s32.totalorder %v1191_v26, 1 }
 0x165   :  { %902 = vrot.lane.b32.xlu1 %v896_v12, %s1665_s23  ;;  %v568_v10 = vrot.slane %v564_v23, %v2361_v41  ;;  %v410_v59 = vrot.slane %v406_v31, %v2361_v41  ;;  %v726_v56 = vrot.slane %v722_v55, %v2361_v41  ;;  %v1029_v9 = vrot.slane %v1025_v32, %v2361_v41 }
 0x166   :  { %v1187_v16 = vrot.slane %v1183_v51, %v2361_v41  ;;  %v1674_v51 = vmov 1966171168  }
 0x167   :  { %1369 = vrot.lane.b32.xlu0 %v1360_v15, %s1672_s13  ;;  %vm2372_vm1 = vcmp.eq.s32.totalorder %v568_v10, 1  ;;  %vm2376_vm3 = vcmp.eq.s32.totalorder %v410_v59, 1  ;;  %vm2389_vm7 = vcmp.eq.s32.totalorder %v726_v56, 1  ;;  %vm2414_vm12 = vcmp.eq.s32.totalorder %v1029_v9, 1 }
 0x168   :  { %vm2426_vm15 = vcmp.eq.s32.totalorder %v1187_v16, 1 }
 0x169   :  { %1055 = vrot.lane.b32.xlu1 %v1052_v29, %s1670_s11  ;;  %v1341_v29 = vsel %vm1340_vm11, 1, %v1673_v25 }
 0x16a   :  { %v1349_v47 = vrot.slane %v1341_v29, %v2364_v21 }
 0x16b   :  { %1373 = vrot.lane.b32.xlu0 %v1367_v35, %s1672_s13 }
 0x16d   :  { %1211 = vrot.lane.b32.xlu1 %v1202_v17, %s1671_s12 }
 0x171   :  { %1215 = vrot.lane.b32.xlu1 %v1209_v46, %s1671_s12 }
 0x175   :  { %1371 = vrot.lane.b32.xlu1 %v1368_v39, %s1672_s13 }
 0x1ab   :  { %v435_v40 = vpop.permute.xlu0 %434  ;;  %v593_v3 = vpop.permute.xlu1 %592 }
 0x1b7   :  { %v751_v43 = vpop.permute.xlu0 %750 }
 0x1bb   :  { %v439_v11 = vpop.permute.xlu0 %438 }
 0x1bf   :  { %v595_v36 = vpop.permute.xlu0 %594 }
 0x1c0   :  { %v599_v50 = vsel %vm598_vm2, %v593_v3, %v595_v36 }
 0x1c1   :  { %v603_v17 = vsel %vm2372_vm1, %v599_v50, 0.0  ;;  %vm1375_vm1 = vcmask 367616   ;;  %v1402_v50 = vunpack.c.l.s4 %v1674_v51 }
 0x1c3   :  { %v755_v44 = vpop.permute.xlu0 %754 }
 0x1c7   :  { %v2353_v45 = vpop.permute.xlu1 %898 }
 0x1c9   :  { %v2355_v33 = vpop.permute.xlu0 %900 }
 0x1cb   :  { %v437_v24 = vpop.permute.xlu1 %436 }
 0x1cc   :  { %v441_v0 = vsel %vm440_vm14, %v435_v40, %v437_v24  ;;  %v442_v57 = vsel %vm440_vm14, %v437_v24, %v439_v11  ;;  %vm1217_vm14 = vcmask 375808   ;;  %v904_v24 = vsel %vm373_vm9, %v2353_v45, %v2355_v33 }
 0x1cd   :  { %v1054_v48 = vpop.permute.xlu0 %1053  ;;  %v445_v58 = vsel %vm2376_vm3, %v441_v0, 0.0  ;;  %v446_v18 = vsel %vm2385_vm6, %v442_v57, 0.0  ;;  %v1403_v57 = vunpack.c.0.s8 %v1402_v50 }
 0x1ce   :  { %v605_v20 = vadd.f32 %v603_v17, %v445_v58 }
 0x1cf   :  { %v597_v42 = vpop.permute.xlu1 %596 }
 0x1d0   :  { %v600_v52 = vsel %vm598_vm2, %v595_v36, %v597_v42  ;;  %vm1351_vm2 = vcmp.eq.s32.totalorder %v1349_v47, 1 }
 0x1d1   :  { %v1058_v38 = vpop.permute.xlu0 %1057  ;;  %v604_v60 = vsel %vm2381_vm5, %v600_v52, 0.0 }
 0x1d2   :  { %v606_v30 = vadd.f32 %v604_v60, %v446_v18  ;;  %v1396_v18 = vld [vmem:[#allocation7] sm:$0xff] }
 0x1d3   :  { %v753_v53 = vpop.permute.xlu1 %752 }
 0x1d4   :  { %v757_v54 = vsel %vm756_vm4, %v751_v43, %v753_v53  ;;  %v758_v7 = vsel %vm756_vm4, %v753_v53, %v755_v44  ;;  %v1345_v44 = vrot.slane %v1341_v29, %v2361_v41 }
 0x1d5   :  { %v1214_v13 = vpop.permute.xlu0 %1213  ;;  %v761_v34 = vsel %vm2389_vm7, %v757_v54, 0.0  ;;  %v762_v19 = vsel %vm2393_vm8, %v758_v7, 0.0  ;;  %v1406_v7 = vsub.s32 %v1403_v57, %v1728_v28 }
 0x1d6   :  { %v763_v35 = vadd.f32 %v761_v34, %v605_v20  ;;  %v764_v49 = vadd.f32 %v762_v19, %v606_v30  ;;  %v1397_v30 = vld [vmem:[#allocation7 + $0x8] sm:$0xff] }
 0x1d7   :  { %v903_v1 = vpop.permute.xlu1 %902 }
 0x1d8   :  { %v905_v40 = vsel %vm373_vm9, %v2355_v33, %v903_v1  ;;  %v908_v31 = vadd.f32 %v904_v24, %v763_v35  ;;  %vm1350_vm9 = vcmp.eq.s32.totalorder %v1345_v44, 1 }
 0x1d9   :  { %v1370_v43 = vpop.permute.xlu0 %1369  ;;  %v909_v23 = vadd.f32 %v905_v40, %v764_v49 }
 0x1db   :  { %v1056_v14 = vpop.permute.xlu1 %1055 }
 0x1dc   :  { %v1060_v46 = vsel %vm1059_vm10, %v1054_v48, %v1056_v14  ;;  %v1061_v39 = vsel %vm1059_vm10, %v1056_v14, %v1058_v38 }
 0x1dd   :  { %v1064_v48 = vsel %vm2414_vm12, %v1060_v46, 0.0  ;;  %v1065_v42 = vsel %vm2418_vm13, %v1061_v39, 0.0  ;;  %v1374_v33 = vpop.permute.xlu0 %1373 }
 0x1de   :  { %v1066_v53 = vadd.f32 %v1064_v48, %v908_v31  ;;  %v1067_v45 = vadd.f32 %v1065_v42, %v909_v23 }
 0x1df   :  { %v1212_v15 = vpop.permute.xlu1 %1211 }
 0x1e0   :  { %v1218_v36 = vsel %vm1217_vm14, %v1212_v15, %v1214_v13 }
 0x1e1   :  { %v1222_v10 = vsel %vm2426_vm15, %v1218_v36, 0.0 }
 0x1e2   :  { %v1224_v22 = vadd.f32 %v1222_v10, %v1066_v53 }
 0x1e3   :  { %v1216_v25 = vpop.permute.xlu1 %1215 }
 0x1e4   :  { %v1219_v55 = vsel %vm1217_vm14, %v1214_v13, %v1216_v25 }
 0x1e5   :  { %v1223_v59 = vsel %vm2431_vm0, %v1219_v55, 0.0 }
 0x1e6   :  { %v1225_v38 = vadd.f32 %v1223_v59, %v1067_v45 }
 0x1e7   :  { %v1372_v61 = vpop.permute.xlu1 %1371 }
 0x1e8   :  { %v1376_v56 = vsel %vm1375_vm1, %v1370_v43, %v1372_v61  ;;  %v1377_v63 = vsel %vm1375_vm1, %v1372_v61, %v1374_v33 }
 0x1e9   :  { %v1380_v62 = vsel %vm1350_vm9, %v1376_v56, 0.0  ;;  %v1381_v2 = vsel %vm1351_vm2, %v1377_v63, 0.0 }
 0x1ea   :  { %v1382_v1 = vadd.f32 %v1380_v62, %v1224_v22  ;;  %v1383_v0 = vadd.f32 %v1381_v2, %v1225_v38 }
 0x1ec   :  { %v1562_v4 = vmul.f32 -1.442695, %v1382_v1  ;;  %v1563_v52 = vmul.f32 -1.442695, %v1383_v0 }
 0x1ee   :  { %1587 = vpow2.f32 %v1562_v4 }
 0x1ef   :  { %1589 = vpow2.f32 %v1563_v52 }
 0x1f8   :  { %v1588_v32 = vpop.eup %1587 }
 0x1f9   :  { %v1590_v37 = vpop.eup %1589  ;;  %v1390_v8 = vadd.f32 1.0, %v1588_v32 }
 0x1fa   :  { %v1391_v6 = vadd.f32 1.0, %v1590_v37 }
 0x1fb   :  { %1591 = vrcp.f32 %v1390_v8 }
 0x1fc   :  { %1593 = vrcp.f32 %v1391_v6 }
 0x205   :  { %v1592_v54 = vpop.eup %1591 }
 0x206   :  { %v1594_v58 = vpop.eup %1593 }
 0x207   :  { %v1400_v60 = vcombine.low %v1592_v54, %v1594_v58 }
 0x209   :  { %v1407_v13 = vrot.slane %v1400_v60, %v1406_v7 }
 0x20b   :  { %v1408_v9 = vcombine.high %v1407_v13, %v1407_v13  ;;  %v1415_v5 = vrot.slane %v1407_v13, %v1406_v7 }
 0x20d   :  { %v1422_v14 = vrot.slane %v1408_v9, %v1406_v7  ;;  %v1426_v16 = vrot.slane %v1415_v5, %v2361_v41  ;;  %v1430_v17 = vrot.slane %v1415_v5, %v2364_v21 }
 0x20f   :  { %v1434_v34 = vrot.slane %v1422_v14, %v2361_v41  ;;  %v1438_v19 = vrot.slane %v1422_v14, %v2364_v21  ;;  %v1439_v20 = vcombine.low %v1426_v16, %v1430_v17 }
 0x211   :  { %v1440_v28 = vcombine.low %v1434_v34, %v1438_v19  ;;  %v1443_v26 = vmul.f32 %v1439_v20, %v1396_v18 }
 0x213   :  { %v1444_v12 = vmul.f32 %v1440_v28, %v1397_v30  ;;  %1445 = vst [vmem:[#allocation8] sm:$0xff] %v1443_v26 }
 0x215   :  { %1446 = vst [vmem:[#allocation8 + $0x8] sm:$0xff] %v1444_v12 }
 0x216   :  { %1638 = shalt.err (!%p1635_p1)
}
 0x217   :  { %s1639_s20 = scalar_lea.hbm %s2472_s3, 256 }
 0x218   :  { %p1640_p2 = scmp.ne.s32.totalorder %s2472_s3, %s1639_s20  ;;  %p1643_p3 = scmp.lt.u32.totalorder %s1639_s20, %s2472_s3 }
 0x21a   :  { %p1645_p4 = pnand %p1643_p3, %p1640_p2 }
 0x21c   :  { %1648 = shalt.err (!%p1645_p4)
}
 0x21d   :  { %1458 = dma.vmem_to_hbm [thread:$0]  %s1453_s17, 256, %s2472_s3, [#allocation5], %s1657_s0, %s1657_s0, %s1658_s5  }
 0x21e   :  { %1653 = dma.done.wait [#allocation5], 256  }
 0x21f   :  { %1654 = vsyncadd [#allocation5], 4294967040 }
 0x220   :  { %1462 = vsyncpa [#allocation4], 1 }
 0x221   :  { %1463 = vsyncpa [#allocation5], 1 }
 0x222   :  { %1464 = vsyncpa [#allocation6], 1 }

</bundles_post_ra>
